<compile_context>
chip_gen: v6e
topology: v6e:2x2x1
jax: 0.10.0
libtpu: 0.0.40
codegen_flags: <defaults>
</compile_context>

<pallas_src>
import functools

import jax
import jax.numpy as jnp
from jax import lax
from jax.experimental import pallas as pl
from jax.experimental.pallas import tpu as pltpu


def _fused_mha_kernel(x_ref, w_ref, o_ref, *, num_heads, d_out, exact_softmax):
    """One batch block: fused QKV projection + per-row, per-head causal attention.

    x_ref : (BB, T, d_in)         VMEM
    w_ref : (d_in, 3*H*d_out)     VMEM  layout: [Q heads | K heads | V heads],
                                        scale already folded into the Q columns
    o_ref : (BB, T, H*d_out)      VMEM
    """
    H = num_heads
    BB, T, d_in = x_ref.shape
    mm_dtype = x_ref.dtype  # bf16 when the wrapper casts inputs, else f32.

    # Single lane-dense projection matmul for all batch rows, heads and Q/K/V
    # (M = BB*T rows on the MXU, f32 accumulation).
    x_flat = x_ref[...].reshape(BB * T, d_in)
    qkv = jnp.dot(x_flat, w_ref[...], preferred_element_type=jnp.float32)
    # Hoisted operand down-cast (no-op on the f32 path).
    qkv = qkv.astype(mm_dtype)

    # Causal mask (strict upper triangle -> -inf), shared by every row/head.
    row = lax.broadcasted_iota(jnp.int32, (T, T), 0)
    col = lax.broadcasted_iota(jnp.int32, (T, T), 1)
    causal = col > row
    neg_inf = jnp.float32(-jnp.inf)

    # q @ k^T expressed as a contraction of the d_out axes (no explicit k.T).
    contract_last = (((1,), (1,)), ((), ()))

    # TODO(synk): for long sequences (T >= 1k) on v7x (64 MiB VMEM), tile KV
    # with an online-softmax (flash) loop instead of materializing (T, T)
    # scores; at this block size the full scores tile is tiny.
    for b in range(BB):                       # static, BB is small
        rows = slice(b * T, (b + 1) * T)
        for h in range(H):                    # static, H is small
            q = qkv[rows, h * d_out:(h + 1) * d_out]
            k = qkv[rows, (H + h) * d_out:(H + h + 1) * d_out]
            v = qkv[rows, (2 * H + h) * d_out:(2 * H + h + 1) * d_out]

            # Scale is already folded into the Q weights -> no scores*scale.
            scores = lax.dot_general(
                q, k, dimension_numbers=contract_last,
                preferred_element_type=jnp.float32)            # (T, T)
            scores = jnp.where(causal, neg_inf, scores)

            # Numerically stable softmax, elementwise math in f32.
            m = jnp.max(scores, axis=-1, keepdims=True)
            p = jnp.exp(scores - m)
            denom = jnp.sum(p, axis=-1, keepdims=True)
            if exact_softmax:
                attn = p / denom                                # strict parity
            else:
                attn = p * pl.reciprocal(denom, approx=True)    # EUP vrcp

            # TODO(synk): attention-weight dropout is identity in eval mode /
            # p=0.0; training-time stochastic dropout not implemented.

            ctx = jnp.dot(attn.astype(mm_dtype), v,
                          preferred_element_type=jnp.float32)   # (T, d_out)

            # Write this head's context into its output columns immediately
            # (== torch.cat(..., dim=-1)); bounds per-head live ranges.
            o_ref[b, :, h * d_out:(h + 1) * d_out] = ctx.astype(o_ref.dtype)


def fuse_qkv_weights(wq, wk, wv, *, compute_dtype=None):
    """Build the fused (d_in, 3*H*d_out) weight once, outside the hot path.

    Columns [0, H*d_out) are the Q heads (with 1/sqrt(d_out) pre-folded, in
    f32 before any cast), then K heads, then V heads; head h occupies columns
    h*d_out:(h+1)*d_out of its section.
    """
    H, d_in, d_out = wq.shape
    scale = jnp.float32(1.0 / (d_out ** 0.5))

    def _stack(w):
        return jnp.transpose(w.astype(jnp.float32), (1, 0, 2)).reshape(d_in, H * d_out)

    w_fused = jnp.concatenate(
        [_stack(wq) * scale, _stack(wk), _stack(wv)], axis=-1)
    if compute_dtype is not None:
        w_fused = w_fused.astype(compute_dtype)
    return w_fused


def _choose_block_b(B, T, target_m=128):
    """Pick a batch block so BB*T feeds the MXU well but the grid keeps >=2 steps."""
    if B <= 1:
        return 1
    bb = max(1, min(B, max(1, target_m // max(T, 1))))
    while B % bb:               # snap down to a divisor of B
        bb -= 1
    if B // bb < 2:             # keep >=2 parallel steps (v7x megacore)
        bb = max(1, B // 2)
        while B % bb:
            bb -= 1
    return bb


def multi_head_attention_fused(x, w_fused, *, num_heads, d_out,
                               block_b=None, compute_dtype=None):
    """x: (B, T, d_in); w_fused from fuse_qkv_weights. Returns (B, T, H*d_out)."""
    B, T, d_in = x.shape
    H = num_heads

    if block_b is None:
        block_b = _choose_block_b(B, T)
    assert B % block_b == 0, (B, block_b)
    grid = (B // block_b,)

    if compute_dtype is not None:
        x_in = x.astype(compute_dtype)
        w_in = w_fused.astype(compute_dtype)
    else:
        x_in = x
        w_in = w_fused.astype(jnp.float32)

    kernel = functools.partial(
        _fused_mha_kernel, num_heads=H, d_out=d_out,
        exact_softmax=(compute_dtype is None))

    return pl.pallas_call(
        kernel,
        out_shape=jax.ShapeDtypeStruct((B, T, H * d_out), x.dtype),
        grid_spec=pltpu.PrefetchScalarGridSpec(
            num_scalar_prefetch=0,
            grid=grid,
            in_specs=[
                # x: BB batch rows per grid step; kernel sees (BB, T, d_in).
                pl.BlockSpec((block_b, T, d_in), lambda i: (i, 0, 0)),
                # fused weights: grid-invariant index map -> fetched once;
                # single-buffered to avoid paying VMEM for a second buffer.
                pl.BlockSpec((d_in, 3 * H * d_out), lambda i: (0, 0),
                             pipeline_mode=pl.Buffered(1)),
            ],
            # lane-dense output slab (BB, T, H*d_out) written in place.
            out_specs=pl.BlockSpec((block_b, T, H * d_out),
                                   lambda i: (i, 0, 0)),
        ),
        compiler_params=pltpu.CompilerParams(
            dimension_semantics=("parallel",),
            vmem_limit_bytes=32 * 1024 * 1024),
    )(x_in, w_in)


def multi_head_attention_wrapper(x, wq, wk, wv, *, compute_dtype=None,
                                 block_b=None):
    """Convenience entry mirroring the PyTorch module's forward.

    x: (B, T, d_in); wq/wk/wv: (H, d_in, d_out). Returns (B, T, H*d_out).
    compute_dtype: optional MXU-operand dtype (bf16 is native on v5e/v6e/v7x);
    accumulation and softmax remain f32, output dtype matches x.
    """
    H, _, d_out = wq.shape
    w_fused = fuse_qkv_weights(wq, wk, wv, compute_dtype=compute_dtype)
    return multi_head_attention_fused(
        x, w_fused, num_heads=H, d_out=d_out,
        block_b=block_b, compute_dtype=compute_dtype)


def _reference(x, wq, wk, wv):
    """Pure-JAX reference mirroring the PyTorch module (eval mode)."""
    B, T, d_in = x.shape
    H, _, d_out = wq.shape
    outs = []
    mask = jnp.triu(jnp.ones((T, T), dtype=bool), k=1)
    for h in range(H):
        q = x @ wq[h]
        k = x @ wk[h]
        v = x @ wv[h]
        s = q @ jnp.swapaxes(k, -1, -2)
        s = jnp.where(mask, -jnp.inf, s)
        w = jax.nn.softmax(s / (d_out ** 0.5), axis=-1)
        outs.append(w @ v)
    return jnp.concatenate(outs, axis=-1)


if __name__ == "__main__":
    # Module hyperparameters (small, consistent with the forward pass):
    B, T = 8, 8                  # batch, num_tokens (== context_length)
    d_in, d_out = 32, 16         # per-head input / output dim
    num_heads = 4
    dropout = 0.0                # deterministic (eval-mode semantics)

    key = jax.random.PRNGKey(0)
    kx, kq, kk, kv = jax.random.split(key, 4)

    x = jax.random.normal(kx, (B, T, d_in), dtype=jnp.float32)
    # Deterministic "Linear" weights, stored pre-transposed as (H, d_in, d_out).
    wq = jax.random.normal(kq, (num_heads, d_in, d_out), dtype=jnp.float32) * 0.1
    wk = jax.random.normal(kk, (num_heads, d_in, d_out), dtype=jnp.float32) * 0.1
    wv = jax.random.normal(kv, (num_heads, d_in, d_out), dtype=jnp.float32) * 0.1

    ref = _reference(x, wq, wk, wv)

    # f32 path: exact softmax division -> tight parity with the reference.
    out = multi_head_attention_wrapper(x, wq, wk, wv)
    out = jax.block_until_ready(out)
    assert out.shape == (B, T, num_heads * d_out), out.shape
    assert jnp.allclose(out, ref, atol=1e-3, rtol=1e-3), "f32 path mismatch"

    # bf16 MXU-operand path (native on v5e/v6e/v7x); f32 accumulation,
    # f32 softmax with the EUP approximate reciprocal, looser tolerance.
    out_bf16 = multi_head_attention_wrapper(x, wq, wk, wv,
                                            compute_dtype=jnp.bfloat16)
    out_bf16 = jax.block_until_ready(out_bf16)
    assert out_bf16.shape == (B, T, num_heads * d_out), out_bf16.shape
    assert jnp.allclose(out_bf16, ref, atol=5e-2, rtol=5e-2), "bf16 path mismatch"

    print("KERNEL_OK")
</pallas_src>

<mosaic_0001>
module attributes {stable_mosaic.version = 11 : i64} {
  func.func @_fused_mha_kernel(%arg0: i32, %arg1: memref<4x8x32xf32, #tpu.memory_space<vmem>>, %arg2: memref<32x192xf32, #tpu.memory_space<vmem>>, %arg3: memref<4x8x64xf32, #tpu.memory_space<vmem>>) attributes {dimension_semantics = [#tpu.dimension_semantics<parallel>], iteration_bounds = array<i64: 2>, scalar_prefetch = 0 : i64, scratch_operands = 0 : i64, tpu.core_type = #tpu.core_type<tc>, window_params = [{transform_indices = @transform_0, window_bounds = array<i64: 4, 8, 32>}, {pipeline_mode = #tpu.pipeline_mode<synchronous>, transform_indices = @transform_1, window_bounds = array<i64: 32, 192>}, {transform_indices = @transform_2, window_bounds = array<i64: 4, 8, 64>}]} {
    %c0 = arith.constant 0 : index
    %c0_0 = arith.constant 0 : index
    %c0_1 = arith.constant 0 : index
    %0 = vector.load %arg1[%c0, %c0_0, %c0_1] : memref<4x8x32xf32, #tpu.memory_space<vmem>>, vector<4x8x32xf32>
    %1 = vector.shape_cast %0 : vector<4x8x32xf32> to vector<32x32xf32>
    %c0_2 = arith.constant 0 : index
    %c0_3 = arith.constant 0 : index
    %2 = vector.load %arg2[%c0_2, %c0_3] : memref<32x192xf32, #tpu.memory_space<vmem>>, vector<32x192xf32>
    %cst = arith.constant dense<0.000000e+00> : vector<32x192xf32>
    %3 = tpu.matmul %1, %2, %cst {dimension_numbers = #tpu.dot_dimension_numbers<[1], [0], [0], [1], [0, 0, 1, 1], [], []>} : vector<32x32xf32>, vector<32x192xf32>, vector<32x192xf32> -> vector<32x192xf32>
    %4 = tpu.iota {dimensions = array<i32: 0>} : vector<8x8xi32>
    %5 = tpu.iota {dimensions = array<i32: 1>} : vector<8x8xi32>
    %6 = arith.cmpi sgt, %5, %4 : vector<8x8xi32>
    %7 = vector.extract_strided_slice %3 {offsets = [0, 0], sizes = [8, 16], strides = [1, 1]} : vector<32x192xf32> to vector<8x16xf32>
    %8 = vector.extract_strided_slice %3 {offsets = [0, 64], sizes = [8, 16], strides = [1, 1]} : vector<32x192xf32> to vector<8x16xf32>
    %9 = vector.extract_strided_slice %3 {offsets = [0, 128], sizes = [8, 16], strides = [1, 1]} : vector<32x192xf32> to vector<8x16xf32>
    %cst_4 = arith.constant dense<0.000000e+00> : vector<8x8xf32>
    %10 = tpu.matmul %7, %8, %cst_4 {dimension_numbers = #tpu.dot_dimension_numbers<[1], [1], [0], [0], [0, 0, 1, 0], [], []>} : vector<8x16xf32>, vector<8x16xf32>, vector<8x8xf32> -> vector<8x8xf32>
    %cst_5 = arith.constant 0xFF800000 : f32
    %11 = vector.broadcast %cst_5 : f32 to vector<8x8xf32>
    %12 = arith.select %6, %11, %10 : vector<8x8xi1>, vector<8x8xf32>
    %cst_6 = arith.constant dense<0xFF800000> : vector<8xf32>
    %13 = vector.multi_reduction <maximumf>, %12, %cst_6 [1] : vector<8x8xf32> to vector<8xf32>
    %14 = vector.shape_cast %13 : vector<8xf32> to vector<8x1xf32>
    %15 = vector.broadcast %14 : vector<8x1xf32> to vector<8x8xf32>
    %16 = arith.subf %12, %15 : vector<8x8xf32>
    %17 = math.exp %16 : vector<8x8xf32>
    %cst_7 = arith.constant dense<0.000000e+00> : vector<8xf32>
    %18 = vector.multi_reduction <add>, %17, %cst_7 [1] : vector<8x8xf32> to vector<8xf32>
    %19 = vector.shape_cast %18 : vector<8xf32> to vector<8x1xf32>
    %20 = vector.broadcast %19 : vector<8x1xf32> to vector<8x8xf32>
    %21 = arith.divf %17, %20 : vector<8x8xf32>
    %cst_8 = arith.constant dense<0.000000e+00> : vector<8x16xf32>
    %22 = tpu.matmul %21, %9, %cst_8 {dimension_numbers = #tpu.dot_dimension_numbers<[1], [0], [0], [1], [0, 0, 1, 1], [], []>} : vector<8x8xf32>, vector<8x16xf32>, vector<8x16xf32> -> vector<8x16xf32>
    %c0_9 = arith.constant 0 : index
    %c0_10 = arith.constant 0 : index
    %c0_11 = arith.constant 0 : index
    %23 = vector.load %arg3[%c0_9, %c0_10, %c0_11] : memref<4x8x64xf32, #tpu.memory_space<vmem>>, vector<1x8x16xf32>
    %24 = vector.shape_cast %23 : vector<1x8x16xf32> to vector<8x16xf32>
    %25 = vector.shape_cast %22 : vector<8x16xf32> to vector<1x8x16xf32>
    tpu.vector_store %arg3[%c0_9, %c0_10, %c0_11], %25 {strides = array<i32>} : memref<4x8x64xf32, #tpu.memory_space<vmem>>, vector<1x8x16xf32>,
    %26 = vector.extract_strided_slice %3 {offsets = [0, 16], sizes = [8, 16], strides = [1, 1]} : vector<32x192xf32> to vector<8x16xf32>
    %27 = vector.extract_strided_slice %3 {offsets = [0, 80], sizes = [8, 16], strides = [1, 1]} : vector<32x192xf32> to vector<8x16xf32>
    %28 = vector.extract_strided_slice %3 {offsets = [0, 144], sizes = [8, 16], strides = [1, 1]} : vector<32x192xf32> to vector<8x16xf32>
    %cst_12 = arith.constant dense<0.000000e+00> : vector<8x8xf32>
    %29 = tpu.matmul %26, %27, %cst_12 {dimension_numbers = #tpu.dot_dimension_numbers<[1], [1], [0], [0], [0, 0, 1, 0], [], []>} : vector<8x16xf32>, vector<8x16xf32>, vector<8x8xf32> -> vector<8x8xf32>
    %cst_13 = arith.constant 0xFF800000 : f32
    %30 = vector.broadcast %cst_13 : f32 to vector<8x8xf32>
    %31 = arith.select %6, %30, %29 : vector<8x8xi1>, vector<8x8xf32>
    %cst_14 = arith.constant dense<0xFF800000> : vector<8xf32>
    %32 = vector.multi_reduction <maximumf>, %31, %cst_14 [1] : vector<8x8xf32> to vector<8xf32>
    %33 = vector.shape_cast %32 : vector<8xf32> to vector<8x1xf32>
    %34 = vector.broadcast %33 : vector<8x1xf32> to vector<8x8xf32>
    %35 = arith.subf %31, %34 : vector<8x8xf32>
    %36 = math.exp %35 : vector<8x8xf32>
    %cst_15 = arith.constant dense<0.000000e+00> : vector<8xf32>
    %37 = vector.multi_reduction <add>, %36, %cst_15 [1] : vector<8x8xf32> to vector<8xf32>
    %38 = vector.shape_cast %37 : vector<8xf32> to vector<8x1xf32>
    %39 = vector.broadcast %38 : vector<8x1xf32> to vector<8x8xf32>
    %40 = arith.divf %36, %39 : vector<8x8xf32>
    %cst_16 = arith.constant dense<0.000000e+00> : vector<8x16xf32>
    %41 = tpu.matmul %40, %28, %cst_16 {dimension_numbers = #tpu.dot_dimension_numbers<[1], [0], [0], [1], [0, 0, 1, 1], [], []>} : vector<8x8xf32>, vector<8x16xf32>, vector<8x16xf32> -> vector<8x16xf32>
    %c0_17 = arith.constant 0 : index
    %c0_18 = arith.constant 0 : index
    %c16 = arith.constant 16 : index
    %42 = vector.load %arg3[%c0_17, %c0_18, %c16] : memref<4x8x64xf32, #tpu.memory_space<vmem>>, vector<1x8x16xf32>
    %43 = vector.shape_cast %42 : vector<1x8x16xf32> to vector<8x16xf32>
    %44 = vector.shape_cast %41 : vector<8x16xf32> to vector<1x8x16xf32>
    tpu.vector_store %arg3[%c0_17, %c0_18, %c16], %44 {strides = array<i32>} : memref<4x8x64xf32, #tpu.memory_space<vmem>>, vector<1x8x16xf32>,
    %45 = vector.extract_strided_slice %3 {offsets = [0, 32], sizes = [8, 16], strides = [1, 1]} : vector<32x192xf32> to vector<8x16xf32>
    %46 = vector.extract_strided_slice %3 {offsets = [0, 96], sizes = [8, 16], strides = [1, 1]} : vector<32x192xf32> to vector<8x16xf32>
    %47 = vector.extract_strided_slice %3 {offsets = [0, 160], sizes = [8, 16], strides = [1, 1]} : vector<32x192xf32> to vector<8x16xf32>
    %cst_19 = arith.constant dense<0.000000e+00> : vector<8x8xf32>
    %48 = tpu.matmul %45, %46, %cst_19 {dimension_numbers = #tpu.dot_dimension_numbers<[1], [1], [0], [0], [0, 0, 1, 0], [], []>} : vector<8x16xf32>, vector<8x16xf32>, vector<8x8xf32> -> vector<8x8xf32>
    %cst_20 = arith.constant 0xFF800000 : f32
    %49 = vector.broadcast %cst_20 : f32 to vector<8x8xf32>
    %50 = arith.select %6, %49, %48 : vector<8x8xi1>, vector<8x8xf32>
    %cst_21 = arith.constant dense<0xFF800000> : vector<8xf32>
    %51 = vector.multi_reduction <maximumf>, %50, %cst_21 [1] : vector<8x8xf32> to vector<8xf32>
    %52 = vector.shape_cast %51 : vector<8xf32> to vector<8x1xf32>
    %53 = vector.broadcast %52 : vector<8x1xf32> to vector<8x8xf32>
    %54 = arith.subf %50, %53 : vector<8x8xf32>
    %55 = math.exp %54 : vector<8x8xf32>
    %cst_22 = arith.constant dense<0.000000e+00> : vector<8xf32>
    %56 = vector.multi_reduction <add>, %55, %cst_22 [1] : vector<8x8xf32> to vector<8xf32>
    %57 = vector.shape_cast %56 : vector<8xf32> to vector<8x1xf32>
    %58 = vector.broadcast %57 : vector<8x1xf32> to vector<8x8xf32>
    %59 = arith.divf %55, %58 : vector<8x8xf32>
    %cst_23 = arith.constant dense<0.000000e+00> : vector<8x16xf32>
    %60 = tpu.matmul %59, %47, %cst_23 {dimension_numbers = #tpu.dot_dimension_numbers<[1], [0], [0], [1], [0, 0, 1, 1], [], []>} : vector<8x8xf32>, vector<8x16xf32>, vector<8x16xf32> -> vector<8x16xf32>
    %c0_24 = arith.constant 0 : index
    %c0_25 = arith.constant 0 : index
    %c32 = arith.constant 32 : index
    %61 = vector.load %arg3[%c0_24, %c0_25, %c32] : memref<4x8x64xf32, #tpu.memory_space<vmem>>, vector<1x8x16xf32>
    %62 = vector.shape_cast %61 : vector<1x8x16xf32> to vector<8x16xf32>
    %63 = vector.shape_cast %60 : vector<8x16xf32> to vector<1x8x16xf32>
    tpu.vector_store %arg3[%c0_24, %c0_25, %c32], %63 {strides = array<i32>} : memref<4x8x64xf32, #tpu.memory_space<vmem>>, vector<1x8x16xf32>,
    %64 = vector.extract_strided_slice %3 {offsets = [0, 48], sizes = [8, 16], strides = [1, 1]} : vector<32x192xf32> to vector<8x16xf32>
    %65 = vector.extract_strided_slice %3 {offsets = [0, 112], sizes = [8, 16], strides = [1, 1]} : vector<32x192xf32> to vector<8x16xf32>
    %66 = vector.extract_strided_slice %3 {offsets = [0, 176], sizes = [8, 16], strides = [1, 1]} : vector<32x192xf32> to vector<8x16xf32>
    %cst_26 = arith.constant dense<0.000000e+00> : vector<8x8xf32>
    %67 = tpu.matmul %64, %65, %cst_26 {dimension_numbers = #tpu.dot_dimension_numbers<[1], [1], [0], [0], [0, 0, 1, 0], [], []>} : vector<8x16xf32>, vector<8x16xf32>, vector<8x8xf32> -> vector<8x8xf32>
    %cst_27 = arith.constant 0xFF800000 : f32
    %68 = vector.broadcast %cst_27 : f32 to vector<8x8xf32>
    %69 = arith.select %6, %68, %67 : vector<8x8xi1>, vector<8x8xf32>
    %cst_28 = arith.constant dense<0xFF800000> : vector<8xf32>
    %70 = vector.multi_reduction <maximumf>, %69, %cst_28 [1] : vector<8x8xf32> to vector<8xf32>
    %71 = vector.shape_cast %70 : vector<8xf32> to vector<8x1xf32>
    %72 = vector.broadcast %71 : vector<8x1xf32> to vector<8x8xf32>
    %73 = arith.subf %69, %72 : vector<8x8xf32>
    %74 = math.exp %73 : vector<8x8xf32>
    %cst_29 = arith.constant dense<0.000000e+00> : vector<8xf32>
    %75 = vector.multi_reduction <add>, %74, %cst_29 [1] : vector<8x8xf32> to vector<8xf32>
    %76 = vector.shape_cast %75 : vector<8xf32> to vector<8x1xf32>
    %77 = vector.broadcast %76 : vector<8x1xf32> to vector<8x8xf32>
    %78 = arith.divf %74, %77 : vector<8x8xf32>
    %cst_30 = arith.constant dense<0.000000e+00> : vector<8x16xf32>
    %79 = tpu.matmul %78, %66, %cst_30 {dimension_numbers = #tpu.dot_dimension_numbers<[1], [0], [0], [1], [0, 0, 1, 1], [], []>} : vector<8x8xf32>, vector<8x16xf32>, vector<8x16xf32> -> vector<8x16xf32>
    %c0_31 = arith.constant 0 : index
    %c0_32 = arith.constant 0 : index
    %c48 = arith.constant 48 : index
    %80 = vector.load %arg3[%c0_31, %c0_32, %c48] : memref<4x8x64xf32, #tpu.memory_space<vmem>>, vector<1x8x16xf32>
    %81 = vector.shape_cast %80 : vector<1x8x16xf32> to vector<8x16xf32>
    %82 = vector.shape_cast %79 : vector<8x16xf32> to vector<1x8x16xf32>
    tpu.vector_store %arg3[%c0_31, %c0_32, %c48], %82 {strides = array<i32>} : memref<4x8x64xf32, #tpu.memory_space<vmem>>, vector<1x8x16xf32>,
    %83 = vector.extract_strided_slice %3 {offsets = [8, 0], sizes = [8, 16], strides = [1, 1]} : vector<32x192xf32> to vector<8x16xf32>
    %84 = vector.extract_strided_slice %3 {offsets = [8, 64], sizes = [8, 16], strides = [1, 1]} : vector<32x192xf32> to vector<8x16xf32>
    %85 = vector.extract_strided_slice %3 {offsets = [8, 128], sizes = [8, 16], strides = [1, 1]} : vector<32x192xf32> to vector<8x16xf32>
    %cst_33 = arith.constant dense<0.000000e+00> : vector<8x8xf32>
    %86 = tpu.matmul %83, %84, %cst_33 {dimension_numbers = #tpu.dot_dimension_numbers<[1], [1], [0], [0], [0, 0, 1, 0], [], []>} : vector<8x16xf32>, vector<8x16xf32>, vector<8x8xf32> -> vector<8x8xf32>
    %cst_34 = arith.constant 0xFF800000 : f32
    %87 = vector.broadcast %cst_34 : f32 to vector<8x8xf32>
    %88 = arith.select %6, %87, %86 : vector<8x8xi1>, vector<8x8xf32>
    %cst_35 = arith.constant dense<0xFF800000> : vector<8xf32>
    %89 = vector.multi_reduction <maximumf>, %88, %cst_35 [1] : vector<8x8xf32> to vector<8xf32>
    %90 = vector.shape_cast %89 : vector<8xf32> to vector<8x1xf32>
    %91 = vector.broadcast %90 : vector<8x1xf32> to vector<8x8xf32>
    %92 = arith.subf %88, %91 : vector<8x8xf32>
    %93 = math.exp %92 : vector<8x8xf32>
    %cst_36 = arith.constant dense<0.000000e+00> : vector<8xf32>
    %94 = vector.multi_reduction <add>, %93, %cst_36 [1] : vector<8x8xf32> to vector<8xf32>
    %95 = vector.shape_cast %94 : vector<8xf32> to vector<8x1xf32>
    %96 = vector.broadcast %95 : vector<8x1xf32> to vector<8x8xf32>
    %97 = arith.divf %93, %96 : vector<8x8xf32>
    %cst_37 = arith.constant dense<0.000000e+00> : vector<8x16xf32>
    %98 = tpu.matmul %97, %85, %cst_37 {dimension_numbers = #tpu.dot_dimension_numbers<[1], [0], [0], [1], [0, 0, 1, 1], [], []>} : vector<8x8xf32>, vector<8x16xf32>, vector<8x16xf32> -> vector<8x16xf32>
    %c1 = arith.constant 1 : index
    %c0_38 = arith.constant 0 : index
    %c0_39 = arith.constant 0 : index
    %99 = vector.load %arg3[%c1, %c0_38, %c0_39] : memref<4x8x64xf32, #tpu.memory_space<vmem>>, vector<1x8x16xf32>
    %100 = vector.shape_cast %99 : vector<1x8x16xf32> to vector<8x16xf32>
    %101 = vector.shape_cast %98 : vector<8x16xf32> to vector<1x8x16xf32>
    tpu.vector_store %arg3[%c1, %c0_38, %c0_39], %101 {strides = array<i32>} : memref<4x8x64xf32, #tpu.memory_space<vmem>>, vector<1x8x16xf32>,
    %102 = vector.extract_strided_slice %3 {offsets = [8, 16], sizes = [8, 16], strides = [1, 1]} : vector<32x192xf32> to vector<8x16xf32>
    %103 = vector.extract_strided_slice %3 {offsets = [8, 80], sizes = [8, 16], strides = [1, 1]} : vector<32x192xf32> to vector<8x16xf32>
    %104 = vector.extract_strided_slice %3 {offsets = [8, 144], sizes = [8, 16], strides = [1, 1]} : vector<32x192xf32> to vector<8x16xf32>
    %cst_40 = arith.constant dense<0.000000e+00> : vector<8x8xf32>
    %105 = tpu.matmul %102, %103, %cst_40 {dimension_numbers = #tpu.dot_dimension_numbers<[1], [1], [0], [0], [0, 0, 1, 0], [], []>} : vector<8x16xf32>, vector<8x16xf32>, vector<8x8xf32> -> vector<8x8xf32>
    %cst_41 = arith.constant 0xFF800000 : f32
    %106 = vector.broadcast %cst_41 : f32 to vector<8x8xf32>
    %107 = arith.select %6, %106, %105 : vector<8x8xi1>, vector<8x8xf32>
    %cst_42 = arith.constant dense<0xFF800000> : vector<8xf32>
    %108 = vector.multi_reduction <maximumf>, %107, %cst_42 [1] : vector<8x8xf32> to vector<8xf32>
    %109 = vector.shape_cast %108 : vector<8xf32> to vector<8x1xf32>
    %110 = vector.broadcast %109 : vector<8x1xf32> to vector<8x8xf32>
    %111 = arith.subf %107, %110 : vector<8x8xf32>
    %112 = math.exp %111 : vector<8x8xf32>
    %cst_43 = arith.constant dense<0.000000e+00> : vector<8xf32>
    %113 = vector.multi_reduction <add>, %112, %cst_43 [1] : vector<8x8xf32> to vector<8xf32>
    %114 = vector.shape_cast %113 : vector<8xf32> to vector<8x1xf32>
    %115 = vector.broadcast %114 : vector<8x1xf32> to vector<8x8xf32>
    %116 = arith.divf %112, %115 : vector<8x8xf32>
    %cst_44 = arith.constant dense<0.000000e+00> : vector<8x16xf32>
    %117 = tpu.matmul %116, %104, %cst_44 {dimension_numbers = #tpu.dot_dimension_numbers<[1], [0], [0], [1], [0, 0, 1, 1], [], []>} : vector<8x8xf32>, vector<8x16xf32>, vector<8x16xf32> -> vector<8x16xf32>
    %c1_45 = arith.constant 1 : index
    %c0_46 = arith.constant 0 : index
    %c16_47 = arith.constant 16 : index
    %118 = vector.load %arg3[%c1_45, %c0_46, %c16_47] : memref<4x8x64xf32, #tpu.memory_space<vmem>>, vector<1x8x16xf32>
    %119 = vector.shape_cast %118 : vector<1x8x16xf32> to vector<8x16xf32>
    %120 = vector.shape_cast %117 : vector<8x16xf32> to vector<1x8x16xf32>
    tpu.vector_store %arg3[%c1_45, %c0_46, %c16_47], %120 {strides = array<i32>} : memref<4x8x64xf32, #tpu.memory_space<vmem>>, vector<1x8x16xf32>,
    %121 = vector.extract_strided_slice %3 {offsets = [8, 32], sizes = [8, 16], strides = [1, 1]} : vector<32x192xf32> to vector<8x16xf32>
    %122 = vector.extract_strided_slice %3 {offsets = [8, 96], sizes = [8, 16], strides = [1, 1]} : vector<32x192xf32> to vector<8x16xf32>
    %123 = vector.extract_strided_slice %3 {offsets = [8, 160], sizes = [8, 16], strides = [1, 1]} : vector<32x192xf32> to vector<8x16xf32>
    %cst_48 = arith.constant dense<0.000000e+00> : vector<8x8xf32>
    %124 = tpu.matmul %121, %122, %cst_48 {dimension_numbers = #tpu.dot_dimension_numbers<[1], [1], [0], [0], [0, 0, 1, 0], [], []>} : vector<8x16xf32>, vector<8x16xf32>, vector<8x8xf32> -> vector<8x8xf32>
    %cst_49 = arith.constant 0xFF800000 : f32
    %125 = vector.broadcast %cst_49 : f32 to vector<8x8xf32>
    %126 = arith.select %6, %125, %124 : vector<8x8xi1>, vector<8x8xf32>
    %cst_50 = arith.constant dense<0xFF800000> : vector<8xf32>
    %127 = vector.multi_reduction <maximumf>, %126, %cst_50 [1] : vector<8x8xf32> to vector<8xf32>
    %128 = vector.shape_cast %127 : vector<8xf32> to vector<8x1xf32>
    %129 = vector.broadcast %128 : vector<8x1xf32> to vector<8x8xf32>
    %130 = arith.subf %126, %129 : vector<8x8xf32>
    %131 = math.exp %130 : vector<8x8xf32>
    %cst_51 = arith.constant dense<0.000000e+00> : vector<8xf32>
    %132 = vector.multi_reduction <add>, %131, %cst_51 [1] : vector<8x8xf32> to vector<8xf32>
    %133 = vector.shape_cast %132 : vector<8xf32> to vector<8x1xf32>
    %134 = vector.broadcast %133 : vector<8x1xf32> to vector<8x8xf32>
    %135 = arith.divf %131, %134 : vector<8x8xf32>
    %cst_52 = arith.constant dense<0.000000e+00> : vector<8x16xf32>
    %136 = tpu.matmul %135, %123, %cst_52 {dimension_numbers = #tpu.dot_dimension_numbers<[1], [0], [0], [1], [0, 0, 1, 1], [], []>} : vector<8x8xf32>, vector<8x16xf32>, vector<8x16xf32> -> vector<8x16xf32>
    %c1_53 = arith.constant 1 : index
    %c0_54 = arith.constant 0 : index
    %c32_55 = arith.constant 32 : index
    %137 = vector.load %arg3[%c1_53, %c0_54, %c32_55] : memref<4x8x64xf32, #tpu.memory_space<vmem>>, vector<1x8x16xf32>
    %138 = vector.shape_cast %137 : vector<1x8x16xf32> to vector<8x16xf32>
    %139 = vector.shape_cast %136 : vector<8x16xf32> to vector<1x8x16xf32>
    tpu.vector_store %arg3[%c1_53, %c0_54, %c32_55], %139 {strides = array<i32>} : memref<4x8x64xf32, #tpu.memory_space<vmem>>, vector<1x8x16xf32>,
    %140 = vector.extract_strided_slice %3 {offsets = [8, 48], sizes = [8, 16], strides = [1, 1]} : vector<32x192xf32> to vector<8x16xf32>
    %141 = vector.extract_strided_slice %3 {offsets = [8, 112], sizes = [8, 16], strides = [1, 1]} : vector<32x192xf32> to vector<8x16xf32>
    %142 = vector.extract_strided_slice %3 {offsets = [8, 176], sizes = [8, 16], strides = [1, 1]} : vector<32x192xf32> to vector<8x16xf32>
    %cst_56 = arith.constant dense<0.000000e+00> : vector<8x8xf32>
    %143 = tpu.matmul %140, %141, %cst_56 {dimension_numbers = #tpu.dot_dimension_numbers<[1], [1], [0], [0], [0, 0, 1, 0], [], []>} : vector<8x16xf32>, vector<8x16xf32>, vector<8x8xf32> -> vector<8x8xf32>
    %cst_57 = arith.constant 0xFF800000 : f32
    %144 = vector.broadcast %cst_57 : f32 to vector<8x8xf32>
    %145 = arith.select %6, %144, %143 : vector<8x8xi1>, vector<8x8xf32>
    %cst_58 = arith.constant dense<0xFF800000> : vector<8xf32>
    %146 = vector.multi_reduction <maximumf>, %145, %cst_58 [1] : vector<8x8xf32> to vector<8xf32>
    %147 = vector.shape_cast %146 : vector<8xf32> to vector<8x1xf32>
    %148 = vector.broadcast %147 : vector<8x1xf32> to vector<8x8xf32>
    %149 = arith.subf %145, %148 : vector<8x8xf32>
    %150 = math.exp %149 : vector<8x8xf32>
    %cst_59 = arith.constant dense<0.000000e+00> : vector<8xf32>
    %151 = vector.multi_reduction <add>, %150, %cst_59 [1] : vector<8x8xf32> to vector<8xf32>
    %152 = vector.shape_cast %151 : vector<8xf32> to vector<8x1xf32>
    %153 = vector.broadcast %152 : vector<8x1xf32> to vector<8x8xf32>
    %154 = arith.divf %150, %153 : vector<8x8xf32>
    %cst_60 = arith.constant dense<0.000000e+00> : vector<8x16xf32>
    %155 = tpu.matmul %154, %142, %cst_60 {dimension_numbers = #tpu.dot_dimension_numbers<[1], [0], [0], [1], [0, 0, 1, 1], [], []>} : vector<8x8xf32>, vector<8x16xf32>, vector<8x16xf32> -> vector<8x16xf32>
    %c1_61 = arith.constant 1 : index
    %c0_62 = arith.constant 0 : index
    %c48_63 = arith.constant 48 : index
    %156 = vector.load %arg3[%c1_61, %c0_62, %c48_63] : memref<4x8x64xf32, #tpu.memory_space<vmem>>, vector<1x8x16xf32>
    %157 = vector.shape_cast %156 : vector<1x8x16xf32> to vector<8x16xf32>
    %158 = vector.shape_cast %155 : vector<8x16xf32> to vector<1x8x16xf32>
    tpu.vector_store %arg3[%c1_61, %c0_62, %c48_63], %158 {strides = array<i32>} : memref<4x8x64xf32, #tpu.memory_space<vmem>>, vector<1x8x16xf32>,
    %159 = vector.extract_strided_slice %3 {offsets = [16, 0], sizes = [8, 16], strides = [1, 1]} : vector<32x192xf32> to vector<8x16xf32>
    %160 = vector.extract_strided_slice %3 {offsets = [16, 64], sizes = [8, 16], strides = [1, 1]} : vector<32x192xf32> to vector<8x16xf32>
    %161 = vector.extract_strided_slice %3 {offsets = [16, 128], sizes = [8, 16], strides = [1, 1]} : vector<32x192xf32> to vector<8x16xf32>
    %cst_64 = arith.constant dense<0.000000e+00> : vector<8x8xf32>
    %162 = tpu.matmul %159, %160, %cst_64 {dimension_numbers = #tpu.dot_dimension_numbers<[1], [1], [0], [0], [0, 0, 1, 0], [], []>} : vector<8x16xf32>, vector<8x16xf32>, vector<8x8xf32> -> vector<8x8xf32>
    %cst_65 = arith.constant 0xFF800000 : f32
    %163 = vector.broadcast %cst_65 : f32 to vector<8x8xf32>
    %164 = arith.select %6, %163, %162 : vector<8x8xi1>, vector<8x8xf32>
    %cst_66 = arith.constant dense<0xFF800000> : vector<8xf32>
    %165 = vector.multi_reduction <maximumf>, %164, %cst_66 [1] : vector<8x8xf32> to vector<8xf32>
    %166 = vector.shape_cast %165 : vector<8xf32> to vector<8x1xf32>
    %167 = vector.broadcast %166 : vector<8x1xf32> to vector<8x8xf32>
    %168 = arith.subf %164, %167 : vector<8x8xf32>
    %169 = math.exp %168 : vector<8x8xf32>
    %cst_67 = arith.constant dense<0.000000e+00> : vector<8xf32>
    %170 = vector.multi_reduction <add>, %169, %cst_67 [1] : vector<8x8xf32> to vector<8xf32>
    %171 = vector.shape_cast %170 : vector<8xf32> to vector<8x1xf32>
    %172 = vector.broadcast %171 : vector<8x1xf32> to vector<8x8xf32>
    %173 = arith.divf %169, %172 : vector<8x8xf32>
    %cst_68 = arith.constant dense<0.000000e+00> : vector<8x16xf32>
    %174 = tpu.matmul %173, %161, %cst_68 {dimension_numbers = #tpu.dot_dimension_numbers<[1], [0], [0], [1], [0, 0, 1, 1], [], []>} : vector<8x8xf32>, vector<8x16xf32>, vector<8x16xf32> -> vector<8x16xf32>
    %c2 = arith.constant 2 : index
    %c0_69 = arith.constant 0 : index
    %c0_70 = arith.constant 0 : index
    %175 = vector.load %arg3[%c2, %c0_69, %c0_70] : memref<4x8x64xf32, #tpu.memory_space<vmem>>, vector<1x8x16xf32>
    %176 = vector.shape_cast %175 : vector<1x8x16xf32> to vector<8x16xf32>
    %177 = vector.shape_cast %174 : vector<8x16xf32> to vector<1x8x16xf32>
    tpu.vector_store %arg3[%c2, %c0_69, %c0_70], %177 {strides = array<i32>} : memref<4x8x64xf32, #tpu.memory_space<vmem>>, vector<1x8x16xf32>,
    %178 = vector.extract_strided_slice %3 {offsets = [16, 16], sizes = [8, 16], strides = [1, 1]} : vector<32x192xf32> to vector<8x16xf32>
    %179 = vector.extract_strided_slice %3 {offsets = [16, 80], sizes = [8, 16], strides = [1, 1]} : vector<32x192xf32> to vector<8x16xf32>
    %180 = vector.extract_strided_slice %3 {offsets = [16, 144], sizes = [8, 16], strides = [1, 1]} : vector<32x192xf32> to vector<8x16xf32>
    %cst_71 = arith.constant dense<0.000000e+00> : vector<8x8xf32>
    %181 = tpu.matmul %178, %179, %cst_71 {dimension_numbers = #tpu.dot_dimension_numbers<[1], [1], [0], [0], [0, 0, 1, 0], [], []>} : vector<8x16xf32>, vector<8x16xf32>, vector<8x8xf32> -> vector<8x8xf32>
    %cst_72 = arith.constant 0xFF800000 : f32
    %182 = vector.broadcast %cst_72 : f32 to vector<8x8xf32>
    %183 = arith.select %6, %182, %181 : vector<8x8xi1>, vector<8x8xf32>
    %cst_73 = arith.constant dense<0xFF800000> : vector<8xf32>
    %184 = vector.multi_reduction <maximumf>, %183, %cst_73 [1] : vector<8x8xf32> to vector<8xf32>
    %185 = vector.shape_cast %184 : vector<8xf32> to vector<8x1xf32>
    %186 = vector.broadcast %185 : vector<8x1xf32> to vector<8x8xf32>
    %187 = arith.subf %183, %186 : vector<8x8xf32>
    %188 = math.exp %187 : vector<8x8xf32>
    %cst_74 = arith.constant dense<0.000000e+00> : vector<8xf32>
    %189 = vector.multi_reduction <add>, %188, %cst_74 [1] : vector<8x8xf32> to vector<8xf32>
    %190 = vector.shape_cast %189 : vector<8xf32> to vector<8x1xf32>
    %191 = vector.broadcast %190 : vector<8x1xf32> to vector<8x8xf32>
    %192 = arith.divf %188, %191 : vector<8x8xf32>
    %cst_75 = arith.constant dense<0.000000e+00> : vector<8x16xf32>
    %193 = tpu.matmul %192, %180, %cst_75 {dimension_numbers = #tpu.dot_dimension_numbers<[1], [0], [0], [1], [0, 0, 1, 1], [], []>} : vector<8x8xf32>, vector<8x16xf32>, vector<8x16xf32> -> vector<8x16xf32>
    %c2_76 = arith.constant 2 : index
    %c0_77 = arith.constant 0 : index
    %c16_78 = arith.constant 16 : index
    %194 = vector.load %arg3[%c2_76, %c0_77, %c16_78] : memref<4x8x64xf32, #tpu.memory_space<vmem>>, vector<1x8x16xf32>
    %195 = vector.shape_cast %194 : vector<1x8x16xf32> to vector<8x16xf32>
    %196 = vector.shape_cast %193 : vector<8x16xf32> to vector<1x8x16xf32>
    tpu.vector_store %arg3[%c2_76, %c0_77, %c16_78], %196 {strides = array<i32>} : memref<4x8x64xf32, #tpu.memory_space<vmem>>, vector<1x8x16xf32>,
    %197 = vector.extract_strided_slice %3 {offsets = [16, 32], sizes = [8, 16], strides = [1, 1]} : vector<32x192xf32> to vector<8x16xf32>
    %198 = vector.extract_strided_slice %3 {offsets = [16, 96], sizes = [8, 16], strides = [1, 1]} : vector<32x192xf32> to vector<8x16xf32>
    %199 = vector.extract_strided_slice %3 {offsets = [16, 160], sizes = [8, 16], strides = [1, 1]} : vector<32x192xf32> to vector<8x16xf32>
    %cst_79 = arith.constant dense<0.000000e+00> : vector<8x8xf32>
    %200 = tpu.matmul %197, %198, %cst_79 {dimension_numbers = #tpu.dot_dimension_numbers<[1], [1], [0], [0], [0, 0, 1, 0], [], []>} : vector<8x16xf32>, vector<8x16xf32>, vector<8x8xf32> -> vector<8x8xf32>
    %cst_80 = arith.constant 0xFF800000 : f32
    %201 = vector.broadcast %cst_80 : f32 to vector<8x8xf32>
    %202 = arith.select %6, %201, %200 : vector<8x8xi1>, vector<8x8xf32>
    %cst_81 = arith.constant dense<0xFF800000> : vector<8xf32>
    %203 = vector.multi_reduction <maximumf>, %202, %cst_81 [1] : vector<8x8xf32> to vector<8xf32>
    %204 = vector.shape_cast %203 : vector<8xf32> to vector<8x1xf32>
    %205 = vector.broadcast %204 : vector<8x1xf32> to vector<8x8xf32>
    %206 = arith.subf %202, %205 : vector<8x8xf32>
    %207 = math.exp %206 : vector<8x8xf32>
    %cst_82 = arith.constant dense<0.000000e+00> : vector<8xf32>
    %208 = vector.multi_reduction <add>, %207, %cst_82 [1] : vector<8x8xf32> to vector<8xf32>
    %209 = vector.shape_cast %208 : vector<8xf32> to vector<8x1xf32>
    %210 = vector.broadcast %209 : vector<8x1xf32> to vector<8x8xf32>
    %211 = arith.divf %207, %210 : vector<8x8xf32>
    %cst_83 = arith.constant dense<0.000000e+00> : vector<8x16xf32>
    %212 = tpu.matmul %211, %199, %cst_83 {dimension_numbers = #tpu.dot_dimension_numbers<[1], [0], [0], [1], [0, 0, 1, 1], [], []>} : vector<8x8xf32>, vector<8x16xf32>, vector<8x16xf32> -> vector<8x16xf32>
    %c2_84 = arith.constant 2 : index
    %c0_85 = arith.constant 0 : index
    %c32_86 = arith.constant 32 : index
    %213 = vector.load %arg3[%c2_84, %c0_85, %c32_86] : memref<4x8x64xf32, #tpu.memory_space<vmem>>, vector<1x8x16xf32>
    %214 = vector.shape_cast %213 : vector<1x8x16xf32> to vector<8x16xf32>
    %215 = vector.shape_cast %212 : vector<8x16xf32> to vector<1x8x16xf32>
    tpu.vector_store %arg3[%c2_84, %c0_85, %c32_86], %215 {strides = array<i32>} : memref<4x8x64xf32, #tpu.memory_space<vmem>>, vector<1x8x16xf32>,
    %216 = vector.extract_strided_slice %3 {offsets = [16, 48], sizes = [8, 16], strides = [1, 1]} : vector<32x192xf32> to vector<8x16xf32>
    %217 = vector.extract_strided_slice %3 {offsets = [16, 112], sizes = [8, 16], strides = [1, 1]} : vector<32x192xf32> to vector<8x16xf32>
    %218 = vector.extract_strided_slice %3 {offsets = [16, 176], sizes = [8, 16], strides = [1, 1]} : vector<32x192xf32> to vector<8x16xf32>
    %cst_87 = arith.constant dense<0.000000e+00> : vector<8x8xf32>
    %219 = tpu.matmul %216, %217, %cst_87 {dimension_numbers = #tpu.dot_dimension_numbers<[1], [1], [0], [0], [0, 0, 1, 0], [], []>} : vector<8x16xf32>, vector<8x16xf32>, vector<8x8xf32> -> vector<8x8xf32>
    %cst_88 = arith.constant 0xFF800000 : f32
    %220 = vector.broadcast %cst_88 : f32 to vector<8x8xf32>
    %221 = arith.select %6, %220, %219 : vector<8x8xi1>, vector<8x8xf32>
    %cst_89 = arith.constant dense<0xFF800000> : vector<8xf32>
    %222 = vector.multi_reduction <maximumf>, %221, %cst_89 [1] : vector<8x8xf32> to vector<8xf32>
    %223 = vector.shape_cast %222 : vector<8xf32> to vector<8x1xf32>
    %224 = vector.broadcast %223 : vector<8x1xf32> to vector<8x8xf32>
    %225 = arith.subf %221, %224 : vector<8x8xf32>
    %226 = math.exp %225 : vector<8x8xf32>
    %cst_90 = arith.constant dense<0.000000e+00> : vector<8xf32>
    %227 = vector.multi_reduction <add>, %226, %cst_90 [1] : vector<8x8xf32> to vector<8xf32>
    %228 = vector.shape_cast %227 : vector<8xf32> to vector<8x1xf32>
    %229 = vector.broadcast %228 : vector<8x1xf32> to vector<8x8xf32>
    %230 = arith.divf %226, %229 : vector<8x8xf32>
    %cst_91 = arith.constant dense<0.000000e+00> : vector<8x16xf32>
    %231 = tpu.matmul %230, %218, %cst_91 {dimension_numbers = #tpu.dot_dimension_numbers<[1], [0], [0], [1], [0, 0, 1, 1], [], []>} : vector<8x8xf32>, vector<8x16xf32>, vector<8x16xf32> -> vector<8x16xf32>
    %c2_92 = arith.constant 2 : index
    %c0_93 = arith.constant 0 : index
    %c48_94 = arith.constant 48 : index
    %232 = vector.load %arg3[%c2_92, %c0_93, %c48_94] : memref<4x8x64xf32, #tpu.memory_space<vmem>>, vector<1x8x16xf32>
    %233 = vector.shape_cast %232 : vector<1x8x16xf32> to vector<8x16xf32>
    %234 = vector.shape_cast %231 : vector<8x16xf32> to vector<1x8x16xf32>
    tpu.vector_store %arg3[%c2_92, %c0_93, %c48_94], %234 {strides = array<i32>} : memref<4x8x64xf32, #tpu.memory_space<vmem>>, vector<1x8x16xf32>,
    %235 = vector.extract_strided_slice %3 {offsets = [24, 0], sizes = [8, 16], strides = [1, 1]} : vector<32x192xf32> to vector<8x16xf32>
    %236 = vector.extract_strided_slice %3 {offsets = [24, 64], sizes = [8, 16], strides = [1, 1]} : vector<32x192xf32> to vector<8x16xf32>
    %237 = vector.extract_strided_slice %3 {offsets = [24, 128], sizes = [8, 16], strides = [1, 1]} : vector<32x192xf32> to vector<8x16xf32>
    %cst_95 = arith.constant dense<0.000000e+00> : vector<8x8xf32>
    %238 = tpu.matmul %235, %236, %cst_95 {dimension_numbers = #tpu.dot_dimension_numbers<[1], [1], [0], [0], [0, 0, 1, 0], [], []>} : vector<8x16xf32>, vector<8x16xf32>, vector<8x8xf32> -> vector<8x8xf32>
    %cst_96 = arith.constant 0xFF800000 : f32
    %239 = vector.broadcast %cst_96 : f32 to vector<8x8xf32>
    %240 = arith.select %6, %239, %238 : vector<8x8xi1>, vector<8x8xf32>
    %cst_97 = arith.constant dense<0xFF800000> : vector<8xf32>
    %241 = vector.multi_reduction <maximumf>, %240, %cst_97 [1] : vector<8x8xf32> to vector<8xf32>
    %242 = vector.shape_cast %241 : vector<8xf32> to vector<8x1xf32>
    %243 = vector.broadcast %242 : vector<8x1xf32> to vector<8x8xf32>
    %244 = arith.subf %240, %243 : vector<8x8xf32>
    %245 = math.exp %244 : vector<8x8xf32>
    %cst_98 = arith.constant dense<0.000000e+00> : vector<8xf32>
    %246 = vector.multi_reduction <add>, %245, %cst_98 [1] : vector<8x8xf32> to vector<8xf32>
    %247 = vector.shape_cast %246 : vector<8xf32> to vector<8x1xf32>
    %248 = vector.broadcast %247 : vector<8x1xf32> to vector<8x8xf32>
    %249 = arith.divf %245, %248 : vector<8x8xf32>
    %cst_99 = arith.constant dense<0.000000e+00> : vector<8x16xf32>
    %250 = tpu.matmul %249, %237, %cst_99 {dimension_numbers = #tpu.dot_dimension_numbers<[1], [0], [0], [1], [0, 0, 1, 1], [], []>} : vector<8x8xf32>, vector<8x16xf32>, vector<8x16xf32> -> vector<8x16xf32>
    %c3 = arith.constant 3 : index
    %c0_100 = arith.constant 0 : index
    %c0_101 = arith.constant 0 : index
    %251 = vector.load %arg3[%c3, %c0_100, %c0_101] : memref<4x8x64xf32, #tpu.memory_space<vmem>>, vector<1x8x16xf32>
    %252 = vector.shape_cast %251 : vector<1x8x16xf32> to vector<8x16xf32>
    %253 = vector.shape_cast %250 : vector<8x16xf32> to vector<1x8x16xf32>
    tpu.vector_store %arg3[%c3, %c0_100, %c0_101], %253 {strides = array<i32>} : memref<4x8x64xf32, #tpu.memory_space<vmem>>, vector<1x8x16xf32>,
    %254 = vector.extract_strided_slice %3 {offsets = [24, 16], sizes = [8, 16], strides = [1, 1]} : vector<32x192xf32> to vector<8x16xf32>
    %255 = vector.extract_strided_slice %3 {offsets = [24, 80], sizes = [8, 16], strides = [1, 1]} : vector<32x192xf32> to vector<8x16xf32>
    %256 = vector.extract_strided_slice %3 {offsets = [24, 144], sizes = [8, 16], strides = [1, 1]} : vector<32x192xf32> to vector<8x16xf32>
    %cst_102 = arith.constant dense<0.000000e+00> : vector<8x8xf32>
    %257 = tpu.matmul %254, %255, %cst_102 {dimension_numbers = #tpu.dot_dimension_numbers<[1], [1], [0], [0], [0, 0, 1, 0], [], []>} : vector<8x16xf32>, vector<8x16xf32>, vector<8x8xf32> -> vector<8x8xf32>
    %cst_103 = arith.constant 0xFF800000 : f32
    %258 = vector.broadcast %cst_103 : f32 to vector<8x8xf32>
    %259 = arith.select %6, %258, %257 : vector<8x8xi1>, vector<8x8xf32>
    %cst_104 = arith.constant dense<0xFF800000> : vector<8xf32>
    %260 = vector.multi_reduction <maximumf>, %259, %cst_104 [1] : vector<8x8xf32> to vector<8xf32>
    %261 = vector.shape_cast %260 : vector<8xf32> to vector<8x1xf32>
    %262 = vector.broadcast %261 : vector<8x1xf32> to vector<8x8xf32>
    %263 = arith.subf %259, %262 : vector<8x8xf32>
    %264 = math.exp %263 : vector<8x8xf32>
    %cst_105 = arith.constant dense<0.000000e+00> : vector<8xf32>
    %265 = vector.multi_reduction <add>, %264, %cst_105 [1] : vector<8x8xf32> to vector<8xf32>
    %266 = vector.shape_cast %265 : vector<8xf32> to vector<8x1xf32>
    %267 = vector.broadcast %266 : vector<8x1xf32> to vector<8x8xf32>
    %268 = arith.divf %264, %267 : vector<8x8xf32>
    %cst_106 = arith.constant dense<0.000000e+00> : vector<8x16xf32>
    %269 = tpu.matmul %268, %256, %cst_106 {dimension_numbers = #tpu.dot_dimension_numbers<[1], [0], [0], [1], [0, 0, 1, 1], [], []>} : vector<8x8xf32>, vector<8x16xf32>, vector<8x16xf32> -> vector<8x16xf32>
    %c3_107 = arith.constant 3 : index
    %c0_108 = arith.constant 0 : index
    %c16_109 = arith.constant 16 : index
    %270 = vector.load %arg3[%c3_107, %c0_108, %c16_109] : memref<4x8x64xf32, #tpu.memory_space<vmem>>, vector<1x8x16xf32>
    %271 = vector.shape_cast %270 : vector<1x8x16xf32> to vector<8x16xf32>
    %272 = vector.shape_cast %269 : vector<8x16xf32> to vector<1x8x16xf32>
    tpu.vector_store %arg3[%c3_107, %c0_108, %c16_109], %272 {strides = array<i32>} : memref<4x8x64xf32, #tpu.memory_space<vmem>>, vector<1x8x16xf32>,
    %273 = vector.extract_strided_slice %3 {offsets = [24, 32], sizes = [8, 16], strides = [1, 1]} : vector<32x192xf32> to vector<8x16xf32>
    %274 = vector.extract_strided_slice %3 {offsets = [24, 96], sizes = [8, 16], strides = [1, 1]} : vector<32x192xf32> to vector<8x16xf32>
    %275 = vector.extract_strided_slice %3 {offsets = [24, 160], sizes = [8, 16], strides = [1, 1]} : vector<32x192xf32> to vector<8x16xf32>
    %cst_110 = arith.constant dense<0.000000e+00> : vector<8x8xf32>
    %276 = tpu.matmul %273, %274, %cst_110 {dimension_numbers = #tpu.dot_dimension_numbers<[1], [1], [0], [0], [0, 0, 1, 0], [], []>} : vector<8x16xf32>, vector<8x16xf32>, vector<8x8xf32> -> vector<8x8xf32>
    %cst_111 = arith.constant 0xFF800000 : f32
    %277 = vector.broadcast %cst_111 : f32 to vector<8x8xf32>
    %278 = arith.select %6, %277, %276 : vector<8x8xi1>, vector<8x8xf32>
    %cst_112 = arith.constant dense<0xFF800000> : vector<8xf32>
    %279 = vector.multi_reduction <maximumf>, %278, %cst_112 [1] : vector<8x8xf32> to vector<8xf32>
    %280 = vector.shape_cast %279 : vector<8xf32> to vector<8x1xf32>
    %281 = vector.broadcast %280 : vector<8x1xf32> to vector<8x8xf32>
    %282 = arith.subf %278, %281 : vector<8x8xf32>
    %283 = math.exp %282 : vector<8x8xf32>
    %cst_113 = arith.constant dense<0.000000e+00> : vector<8xf32>
    %284 = vector.multi_reduction <add>, %283, %cst_113 [1] : vector<8x8xf32> to vector<8xf32>
    %285 = vector.shape_cast %284 : vector<8xf32> to vector<8x1xf32>
    %286 = vector.broadcast %285 : vector<8x1xf32> to vector<8x8xf32>
    %287 = arith.divf %283, %286 : vector<8x8xf32>
    %cst_114 = arith.constant dense<0.000000e+00> : vector<8x16xf32>
    %288 = tpu.matmul %287, %275, %cst_114 {dimension_numbers = #tpu.dot_dimension_numbers<[1], [0], [0], [1], [0, 0, 1, 1], [], []>} : vector<8x8xf32>, vector<8x16xf32>, vector<8x16xf32> -> vector<8x16xf32>
    %c3_115 = arith.constant 3 : index
    %c0_116 = arith.constant 0 : index
    %c32_117 = arith.constant 32 : index
    %289 = vector.load %arg3[%c3_115, %c0_116, %c32_117] : memref<4x8x64xf32, #tpu.memory_space<vmem>>, vector<1x8x16xf32>
    %290 = vector.shape_cast %289 : vector<1x8x16xf32> to vector<8x16xf32>
    %291 = vector.shape_cast %288 : vector<8x16xf32> to vector<1x8x16xf32>
    tpu.vector_store %arg3[%c3_115, %c0_116, %c32_117], %291 {strides = array<i32>} : memref<4x8x64xf32, #tpu.memory_space<vmem>>, vector<1x8x16xf32>,
    %292 = vector.extract_strided_slice %3 {offsets = [24, 48], sizes = [8, 16], strides = [1, 1]} : vector<32x192xf32> to vector<8x16xf32>
    %293 = vector.extract_strided_slice %3 {offsets = [24, 112], sizes = [8, 16], strides = [1, 1]} : vector<32x192xf32> to vector<8x16xf32>
    %294 = vector.extract_strided_slice %3 {offsets = [24, 176], sizes = [8, 16], strides = [1, 1]} : vector<32x192xf32> to vector<8x16xf32>
    %cst_118 = arith.constant dense<0.000000e+00> : vector<8x8xf32>
    %295 = tpu.matmul %292, %293, %cst_118 {dimension_numbers = #tpu.dot_dimension_numbers<[1], [1], [0], [0], [0, 0, 1, 0], [], []>} : vector<8x16xf32>, vector<8x16xf32>, vector<8x8xf32> -> vector<8x8xf32>
    %cst_119 = arith.constant 0xFF800000 : f32
    %296 = vector.broadcast %cst_119 : f32 to vector<8x8xf32>
    %297 = arith.select %6, %296, %295 : vector<8x8xi1>, vector<8x8xf32>
    %cst_120 = arith.constant dense<0xFF800000> : vector<8xf32>
    %298 = vector.multi_reduction <maximumf>, %297, %cst_120 [1] : vector<8x8xf32> to vector<8xf32>
    %299 = vector.shape_cast %298 : vector<8xf32> to vector<8x1xf32>
    %300 = vector.broadcast %299 : vector<8x1xf32> to vector<8x8xf32>
    %301 = arith.subf %297, %300 : vector<8x8xf32>
    %302 = math.exp %301 : vector<8x8xf32>
    %cst_121 = arith.constant dense<0.000000e+00> : vector<8xf32>
    %303 = vector.multi_reduction <add>, %302, %cst_121 [1] : vector<8x8xf32> to vector<8xf32>
    %304 = vector.shape_cast %303 : vector<8xf32> to vector<8x1xf32>
    %305 = vector.broadcast %304 : vector<8x1xf32> to vector<8x8xf32>
    %306 = arith.divf %302, %305 : vector<8x8xf32>
    %cst_122 = arith.constant dense<0.000000e+00> : vector<8x16xf32>
    %307 = tpu.matmul %306, %294, %cst_122 {dimension_numbers = #tpu.dot_dimension_numbers<[1], [0], [0], [1], [0, 0, 1, 1], [], []>} : vector<8x8xf32>, vector<8x16xf32>, vector<8x16xf32> -> vector<8x16xf32>
    %c3_123 = arith.constant 3 : index
    %c0_124 = arith.constant 0 : index
    %c48_125 = arith.constant 48 : index
    %308 = vector.load %arg3[%c3_123, %c0_124, %c48_125] : memref<4x8x64xf32, #tpu.memory_space<vmem>>, vector<1x8x16xf32>
    %309 = vector.shape_cast %308 : vector<1x8x16xf32> to vector<8x16xf32>
    %310 = vector.shape_cast %307 : vector<8x16xf32> to vector<1x8x16xf32>
    tpu.vector_store %arg3[%c3_123, %c0_124, %c48_125], %310 {strides = array<i32>} : memref<4x8x64xf32, #tpu.memory_space<vmem>>, vector<1x8x16xf32>,
    return
  }
  func.func @transform_0(%arg0: i32) -> (i32, i32, i32) {
    %c0_i32 = arith.constant 0 : i32
    %c0_i32_0 = arith.constant 0 : i32
    %c0_i32_1 = arith.constant 0 : i32
    return %arg0, %c0_i32, %c0_i32_0 : i32, i32, i32
  }
  func.func @transform_1(%arg0: i32) -> (i32, i32) {
    %c0_i32 = arith.constant 0 : i32
    %c0_i32_0 = arith.constant 0 : i32
    %c0_i32_1 = arith.constant 0 : i32
    return %c0_i32, %c0_i32_0 : i32, i32
  }
  func.func @transform_2(%arg0: i32) -> (i32, i32, i32) {
    %c0_i32 = arith.constant 0 : i32
    %c0_i32_0 = arith.constant 0 : i32
    %c0_i32_1 = arith.constant 0 : i32
    return %arg0, %c0_i32, %c0_i32_0 : i32, i32, i32
  }
}

</mosaic_0001>

<bundles_post_ra>
// kernel: tpu_custom_call.1
= control target key start
LH: loop header
LB: loop body
LE: loop exit
PB: predicated region body
PF: predicated region fallthrough
CT: control target
= control target key end

     0   :  { %7 = vsyncpa [#allocation3], 0  ;;  %s4413_s0 = inlined_call_operand.hbm [shape: f32[8,8,32], index: 0, kind: input, shape index: {}]   ;;  %s4414_s1 = inlined_call_operand.hbm [shape: f32[32,192], index: 1, kind: input, shape index: {}]   ;;  %s4415_s2 = inlined_call_operand.hbm [shape: f32[8,8,64], index: 2, kind: output, shape index: {}]  }
   0x1   :  { %9 = vsyncpa [#allocation3 + $0x1], 0 }
   0x2   :  { %10 = vsyncpa [#allocation6], 0 }
   0x3   :  { %11 = vsyncpa [#allocation4], 0 }
   0x4   :  { %13 = vsyncpa [#allocation4 + $0x1], 0  ;;  %s3710_s9 = smov 0   ;;  %s3712_s10 = smov 0  }
   0x5   :  { %s3714_s11 = smov 0   ;;  %s3716_s12 = smov 0  }
   0x6 LB: > { %s3731_s13 = sadd.s32 4294967295, %s3675_s12   ;;  %s3111_s14 = sadd.s32 4294967294, %s3675_s12   ;;  %s3675_s12 = sphi %s3716_s12, %s4439_s12   ;;  %s3671_s11 = sphi %s3714_s11, %s4438_s11   ;;  %s3667_s10 = sphi %s3712_s10, %s4437_s10   ;;  %s3663_s9 = sphi %s3710_s9, %s4436_s9  }
   0x7   : > { %p39_p0 = scmp.ne.s32.totalorder %s3667_s10, %s3663_s9  ;;  %p4416_p1 = scmp.eq.s32.totalorder %s3731_s13, 0 }
   0x8   : > { %p90_p3 = scmp.eq.s32.totalorder %s3111_s14, 1  ;;  %p3112_p5 = scmp.ge.s32.totalorder %s3675_s12, 1 }
   0x9   : > { %p3740_p4 = por %p4416_p1, %p39_p0  ;;  %p97_p7 = scmp.lt.s32.totalorder %s3675_s12, 3 }
   0xa   : > { %p3745_p6 = por %p90_p3, %p39_p0  ;;  %s3677_s18 = smov [#allocation5]  }
   0xb   : > { %s4420_s15 = scalar_select %p3740_p4, 1, 0 }
   0xc   : > { %s4421_s16 = scalar_select %p3745_p6, 1, 0 }
   0xd   : > { %p3750_p8 = pnand %p3112_p5, %p97_p7  ;;  %s109_s19 = sshll.u32 %s3677_s18, 4  ;;  %s110_s19 = int_to_ptr.vmem [resolvable:$true] %s109_s19 }
   0xe   : > { %s3764_s21 = sadd.s32 1, %s3675_s12   ;;  %s26_s22 = sadd.s32 1, %s3671_s11 }
   0xf   : > { %s4422_s17 = scalar_select %p3750_p8, 1, 0 }
  0x10   : > { %p3425_p9 = pneg %p3750_p8  ;;  %s23_s23 = ssub.s32 %s3675_s12, %s3764_s21 }
  0x11   : > { %s3564_s24 = scalar_lea.vmem %s110_s19, 1024  ;;  %p3572_p5 = scmp.lt.s32.totalorder %s110_s19, %s110_s19 }
  0x12   : > { %p3759_p11 = pnand %p3425_p9, %p4416_p1  ;;  %p3565_p13 = scmp.ne.s32.totalorder %s110_s19, %s3564_s24 }
  0x13   : > { %p3573_p7 = scmp.lt.s32.totalorder %s3564_s24, %s3564_s24 }
  0x14   : > { %p3555_p12 = pneg %p3759_p11 }
  0x15   : > { %p3574_p10 = por %p3573_p7, %p3572_p5 }
  0x16   : > { %p3567_p0 = pnand %p3565_p13, %p3555_p12 }
  0x18   : > { %p3568_p3 = pneg %p3567_p0 }
  0x1a   : > { %p3575_p2 = pnand %p3574_p10, %p3568_p3 }
  0x1c   : > { %3578 = shalt.err (!%p3575_p2)
}
  0x1d   : > { %s3678_s25 = smov 256   ;;  %s3679_s26 = smov 16  }
  0x1e   : > { %3428 = dma.hbm_to_vmem [thread:$0]  (!%p3759_p11), %s4414_s1, 1024, %s110_s19, [#allocation6], %s3678_s25, %s3678_s25, %s3679_s26  }
  0x1f   : > { %p24_p9 = scmp.eq.s32.totalorder %s23_s23, 0  ;;  %p33_p12 = scmp.ne.s32.totalorder %s3671_s11, %s3667_s10 }
  0x20   : > { %p34_p10 = scmp.eq.s32.totalorder %s3675_s12, 0  ;;  %p3438_p2 = scmp.lt.s32.totalorder %s3675_s12, 2 }
  0x21   : > { %s3781_s29 = scalar_select %p24_p9, %s3671_s11, %s26_s22  }
  0x22   : > { %p35_p13 = por %p34_p10, %p33_p12  ;;  %p4424_p0 = scmp.eq.s32.totalorder %s3731_s13, 1 }
  0x23   : > { %s123_s3 = sand.u32 1, %s3671_s11   ;;  %s3191_s4 = sshll.u32 %s3675_s12, 9 }
  0x24   : > { %p3785_p3 = por %p4424_p0, %p33_p12  ;;  %s3115_s5 = sshll.u32 %s123_s3, 5 }
  0x25   : > { %s3794_s8 = scalar_lea.hbm %s4413_s0, %s3191_s4  ;;  %s127_s14 = scalar_lea.vmem [#allocation2], %s3115_s5 }
  0x26   : > { %s4425_s30 = scalar_select %p3785_p3, 1, 0 }
  0x27   : > { %s134_s18 = sshll.u32 %s127_s14, 4  ;;  %p3796_p11 = pnand %p3438_p2, %p35_p13  ;;  %s3800_s18 = int_to_ptr.vmem [resolvable:$true] %s134_s18 }
  0x28   : > { %s3802_s20 = scalar_lea.sflag [#allocation3], %s123_s3  ;;  %s3579_s22 = scalar_lea.hbm %s3794_s8, 512 }
  0x29   : > { %p3580_p5 = scmp.ne.s32.totalorder %s3794_s8, %s3579_s22  ;;  %p3581_p7 = pneg %p3796_p11 }
  0x2a   : > { %s3584_s25 = scalar_lea.hbm %s4413_s0, 1024  ;;  %p3585_p10 = scmp.lt.s32.totalorder %s3794_s8, %s4413_s0 }
  0x2b   : > { %p3582_p9 = pnand %p3581_p7, %p3580_p5  ;;  %p3586_p2 = scmp.lt.s32.totalorder %s3584_s25, %s3579_s22 }
  0x2d   : > { %p3583_p12 = pneg %p3582_p9  ;;  %p3587_p13 = por %p3586_p2, %p3585_p10 }
  0x2f   : > { %p3588_p0 = pnand %p3587_p13, %p3583_p12 }
  0x31   : > { %3591 = shalt.err (!%p3588_p0)
}
  0x32   : > { %s3592_s28 = scalar_lea.vmem %s3800_s18, 512  ;;  %s3680_s3 = smov [#allocation2]  }
  0x33   : > { %p3593_p1 = scmp.ne.s32.totalorder %s3800_s18, %s3592_s28  ;;  %s3597_s4 = sshll.u32 %s3680_s3, 4  ;;  %s3598_s4 = int_to_ptr.vmem [resolvable:$false] %s3597_s4 }
  0x34   : > { %s3599_s5 = scalar_lea.vmem %s3598_s4, 1024  ;;  %p3600_p9 = scmp.lt.s32.totalorder %s3800_s18, %s3598_s4 }
  0x35   : > { %p3595_p6 = pnand %p3593_p1, %p3581_p7  ;;  %p3601_p3 = scmp.lt.s32.totalorder %s3599_s5, %s3592_s28 }
  0x37   : > { %p3596_p5 = pneg %p3595_p6  ;;  %p3602_p4 = por %p3601_p3, %p3600_p9 }
  0x39   : > { %p3603_p8 = pnand %p3602_p4, %p3596_p5 }
  0x3b   : > { %3606 = shalt.err (!%p3603_p8)
}
  0x3c   : > { %s3681_s6 = smov 128   ;;  %s3682_s7 = smov 8  }
  0x3d   : > { %3432 = dma.hbm_to_vmem [thread:$0]  (!%p3796_p11), %s3794_s8, 512, %s3800_s18, %s3802_s20, %s3681_s6, %s3681_s6, %s3682_s7  }
  0x3e   : > { %p4427_p1 = scmp.ne.s32.totalorder %s4422_s17, 0 }
  0x3f   : > { %s3826_s14 = sand.u32 (!%p4427_p1), 1, %s3667_s10   ;;  %p4428_p4 = scmp.ne.s32.totalorder (!%p4427_p1), %s4420_s15, 0 }
  0x40   : > { %146 = sbr.rel (%p4427_p1) target bundleno = 2356 (0x934), region = 28  ;;  %s3119_s22 = sshll.u32 (!%p4427_p1), %s3826_s14, 5 }
  0x41   : > { %s149_s23 = scalar_lea.sflag (!%p4427_p1), [#allocation3], %s3826_s14  ;;  %s3832_s24 = scalar_lea.vmem (!%p4427_p1), [#allocation2], %s3119_s22 }
  0x45   : > { %3650 = dma.done.wait (%p4428_p4), %s149_s23, 512  }
  0x46   : > { %3652 = vsyncadd (%p4428_p4), %s149_s23, 4294966784  ;;  %p4429_p6 = scmp.eq.s32.totalorder %s3731_s13, 0 }
  0x48   : > { %3654 = dma.done.wait (%p4429_p6), [#allocation6], 1024   ;;  %p4430_p8 = pmov %p4429_p6 }
  0x49   : > { %v3683_v0 = vmov 0.0   ;;  %v190_v1 = vld [vmem:[#allocation5 + $0x38] sm:$0xff]  ;;  %v189_v2 = vld [vmem:[#allocation5 + $0x30] sm:$0xff]  ;;  %v188_v3 = vld [vmem:[#allocation5 + $0x28] sm:$0xff]  ;;  %vm191_vm0 = vcmask 261120   ;;  %vm3684_vm1 = vmmov 0   ;;  %v293_v13 = vlaneseq }
  0x4a   : > { %3656 = vsyncadd (%p4430_p8), [#allocation6], 4294966272  ;;  %268 = vmatprep.mubr.f32.mxu0 %v3683_v0  ;;  %3257 = vmatprep.subr.mxu1 %v3683_v0  ;;  %v187_v4 = vld [vmem:[#allocation5 + $0x20] sm:$0xff]  ;;  %v186_v5 = vld [vmem:[#allocation5 + $0x18] sm:$0xff]  ;;  %s3685_s15 = smov 48   ;;  %s3686_s17 = smov 64  }
  0x4b   : > { %228 = vmatprep.subr.mxu0 %v190_v1  ;;  %v185_v6 = vld [vmem:[#allocation5 + $0x10] sm:$0xff]  ;;  %v184_v7 = vld [vmem:[#allocation5 + $0x8] sm:$0xff]  ;;  %v183_v8 = vld [vmem:[#allocation5] sm:$0xff]  ;;  %3259 = vmatprep.mubr.msk.f32.mxu1 %vm3684_vm1, %v3683_v0  ;;  %vm301_vm2 = vcmask 130048   ;;  %v294_v14 = vshrl.u32 %v293_v13, 7  ;;  %v296_v15 = vand.u32 127, %v293_v13 }
  0x4c   : > { %229 = vmatpush1.msra.mxu0 %v189_v2  ;;  %v179_v9 = vld [vmem:[%s3832_s24] sm:$0xff]  ;;  %vm377_vm4 = vcmask 64512   ;;  %s3687_s8 = smov 112   ;;  %s3688_s18 = smov 32   ;;  %v180_v26 = vld [vmem:[%s3832_s24 + $0x8] sm:$0xff]  ;;  %v181_v27 = vld [vmem:[%s3832_s24 + $0x10] sm:$0xff] }
  0x4d   : > { %230 = vmatprep.subr.mxu0 %v188_v3  ;;  %vm3866_vm3 = vcmp.gt.s32.totalorder %v296_v15, %v294_v14  ;;  %v182_v28 = vld [vmem:[%s3832_s24 + $0x18] sm:$0xff]  ;;  %s3901_s19 = scalar_lea.vmem [#allocation7], %s3119_s22  ;;  %s3689_s20 = smov 96   ;;  %vm634_vm5 = vcmask 261248   ;;  %vm806_vm6 = vcmask 392448   ;;  %vm978_vm7 = vcmask 523648  }
  0x4e   : > { %231 = vmatpush1.msra.mxu0 %v187_v4  ;;  %s3690_s25 = smov 80   ;;  %s3691_s26 = smov 16  }
  0x4f   : > { %232 = vmatprep.subr.mxu0 %v186_v5  ;;  %s3192_s27 = sshll.u32 %s3731_s13, 9  ;;  %s3028_s28 = sshll.u32 %s3901_s19, 4  ;;  %s4368_s28 = int_to_ptr.vmem [resolvable:$true] %s3028_s28 }
  0x50   : > { %233 = vmatpush1.msra.mxu0 %v185_v6  ;;  %s4366_s5 = scalar_lea.hbm %s4415_s2, %s3192_s27  ;;  %s3015_s6 = scalar_lea.sflag [#allocation4], %s3826_s14 }
  0x51   : > { %234 = vmatprep.subr.mxu0 %v184_v7  ;;  %s3607_s7 = scalar_lea.vmem %s4368_s28, 512  ;;  %p4433_p11 = scmp.ne.s32.totalorder %s4425_s30, 0 }
  0x52   : > { %235 = vmatpush1.msra.mxu0 %v183_v8  ;;  %p3608_p3 = scmp.ne.s32.totalorder %s4368_s28, %s3607_s7  ;;  %s3692_s13 = smov [#allocation7]  }
  0x53   : > { %3122 = vmatmul.mubr.msk.f32.vlgmr.msra.gmra.mxu0 %vm191_vm0, %v179_v9  ;;  %3282 = vmatprep.subr.mxu0 %v3683_v0  ;;  %s3611_s22 = sshll.u32 %s3692_s13, 4  ;;  %s3612_s22 = int_to_ptr.vmem [resolvable:$false] %s3611_s22 }
  0x54   : > { %274 = vmatprep.mubr.f32.mxu0 %v3683_v0  ;;  %p3609_p7 = pnand %p3608_p3, %p4433_p11  ;;  %s3613_s23 = scalar_lea.vmem %s3612_s22, 1024 }
  0x55   : > { %p3614_p10 = scmp.lt.s32.totalorder %s4368_s28, %s3612_s22  ;;  %p3615_p2 = scmp.lt.s32.totalorder %s3613_s23, %s3607_s7 }
  0x56   : > { %p3610_p12 = pneg %p3609_p7 }
  0x57   : > { %3123 = vmatmul.mubr.msk.f32.gmra.mxu0 %vm191_vm0, %v180_v26  ;;  %p3616_p13 = por %p3615_p2, %p3614_p10 }
  0x58   : > { %280 = vmatprep.mubr.f32.mxu0 %v3683_v0 }
  0x59   : > { %p3617_p0 = pnand %p3616_p13, %p3610_p12 }
  0x5b   : > { %3124 = vmatmul.mubr.msk.f32.gmra.mxu0 %vm191_vm0, %v181_v27 }
  0x5c   : > { %286 = vmatprep.mubr.f32.mxu0 %v3683_v0 }
  0x5f   : > { %3125 = vmatmul.mubr.msk.f32.gmra.mxu0 %vm191_vm0, %v182_v28 }
  0x60   : > { %3284 = vmatprep.mubr.msk.f32.mxu0 %vm3684_vm1, %v3683_v0 }
 0x113   : > { %v3850_v10 = vpop.f32.mrf.mxu0 }
 0x114   : > { %465 = vrot.lane.b32.xlu1 %v3850_v10, %s3685_s15  ;;  %299 = vrot.lane.b32.xlu0 %v3850_v10, %s3686_s17 }
 0x115   : > { %v3858_v12 = vpop.f32.mrf.mxu0 }
 0x117   : > { %v3910_v41 = vpop.f32.mrf.mxu0 }
 0x119   : > { %v3916_v42 = vpop.f32.mrf.mxu0 }
 0x11b   : > { %v3920_v43 = vpop.f32.mrf.mxu0 }
 0x11d   : > { %v3926_v44 = vpop.f32.mrf.mxu0 }
 0x11f   : > { %v3930_v45 = vpop.f32.mrf.mxu0 }
 0x186   : > { %v300_v11 = vpop.permute.xlu0 %299  ;;  %v466_v29 = vpop.permute.xlu1 %465 }
 0x187   : > { %3258 = vmatpush3.xpose.msk.msra.mxu1 %vm301_vm2, %v300_v11 }
 0x188   : > { %3262 = vmatprep.subr.mxu1 %v3683_v0 }
 0x18a   : > { %3260 = vmatmul.mubr.msk.f32.vlgmr.msra.gmra.mxu1 %vm301_vm2, %v3850_v10 }
 0x18b   : > { %3263 = vmatpush3.msra.mxu1 %v3858_v12  ;;  %3264 = vmatprep.mubr.msk.f32.mxu1 %vm3684_vm1, %v3683_v0 }
 0x18c   : > { %3267 = vmatprep.subr.mxu1 %v3683_v0 }
 0x24a   : > { %v372_v17 = vpop.f32.mrf.mxu1 }
 0x24b   : > { %v376_v18 = vsel %vm3866_vm3, -inf, %v372_v17 }
 0x24c   : > { %v3261_v19 = vpop.f32.mrf.mxu1  ;;  %v378_v20 = vsel %vm377_vm4, %v376_v18, -inf }
 0x24d   : > { %379 = vmax.xlane.f32.xlu0 %v378_v20 }
 0x263   : > { %554 = vrot.lane.b32.xlu0 %v3858_v12, %s3687_s8 }
 0x267   : > { %638 = vrot.lane.b32.xlu0 %v3850_v10, %s3688_s18 }
 0x2d6   : > { %v380_v21 = vpop.xlane.xlu0 %379 }
 0x2d7   : > { %v381_v22 = vsub.f32 %v376_v18, %v380_v21 }
 0x2d9   : > { %v382_v23 = vmul.f32 1.442695, %v381_v22 }
 0x2da   : > { %v555_v34 = vpop.permute.xlu0 %554 }
 0x2db   : > { %3489 = vpow2.f32 %v382_v23 }
 0x2de   : > { %v639_v63 = vpop.permute.xlu0 %638 }
 0x2e8   : > { %v3490_v24 = vpop.eup %3489 }
 0x2e9   : > { %v384_v25 = vsel %vm377_vm4, %v3490_v24, 0.0 }
 0x2ea   : > { %385 = vadd.xlane.f32.xlu1 %v384_v25 }
 0x2fb   : > { %463 = vrot.lane.b32.xlu1 %v3850_v10, %s3687_s8 }
 0x373   : > { %v386_v30 = vpop.xlane.xlu1 %385 }
 0x374   : > { %3491 = vrcp.f32 %v386_v30 }
 0x377   : > { %v464_v33 = vpop.permute.xlu1 %463 }
 0x381   : > { %v3492_v31 = vpop.eup %3491 }
 0x382   : > { %v388_v32 = vmul.f32 %v3492_v31, %v3490_v24 }
 0x384   : > { %3265 = vmatmul.mubr.msk.f32.vlgmr.msra.gmra.mxu1 %vm377_vm4, %v388_v32 }
 0x385   : > { %3268 = vmatpush3.xpose.msk.msra.mxu1 %vm301_vm2, %v466_v29  ;;  %3269 = vmatprep.mubr.msk.f32.mxu1 %vm3684_vm1, %v3683_v0 }
 0x386   : > { %3272 = vmatprep.subr.mxu1 %v3683_v0 }
 0x388   : > { %3270 = vmatmul.mubr.msk.f32.vlgmr.msra.gmra.mxu1 %vm301_vm2, %v464_v33 }
 0x389   : > { %3273 = vmatpush3.msra.mxu1 %v555_v34  ;;  %3274 = vmatprep.mubr.msk.f32.mxu1 %vm3684_vm1, %v3683_v0 }
 0x38a   : > { %3277 = vmatprep.subr.mxu1 %v3683_v0 }
 0x444   : > { %v458_v35 = vpop.f32.mrf.mxu1 }
 0x445   : > { %462 = vst.msk [vmem:[%s3901_s19] sm:$0xff] %vm301_vm2, %v458_v35 }
 0x446   : > { %v3266_v36 = vpop.f32.mrf.mxu1 }
 0x448   : > { %v537_v37 = vpop.f32.mrf.mxu1 }
 0x449   : > { %v541_v38 = vsel %vm3866_vm3, -inf, %v537_v37 }
 0x44a   : > { %v3271_v39 = vpop.f32.mrf.mxu1  ;;  %v542_v40 = vsel %vm377_vm4, %v541_v38, -inf }
 0x44b   : > { %543 = vmax.xlane.f32.xlu1 %v542_v40 }
 0x45c   : > { %636 = vrot.lane.b32.xlu1 %v3850_v10, %s3689_s20 }
 0x460   : > { %1144 = vrot.lane.b32.xlu1 %v3910_v41, %s3687_s8 }
 0x464   : > { %1316 = vrot.lane.b32.xlu1 %v3910_v41, %s3689_s20 }
 0x468   : > { %1487 = vrot.lane.b32.xlu1 %v3910_v41, %s3690_s25 }
 0x46c   : > { %1824 = vrot.lane.b32.xlu1 %v3920_v43, %s3685_s15 }
 0x470   : > { %1996 = vrot.lane.b32.xlu1 %v3920_v43, %s3688_s18 }
 0x474   : > { %2167 = vrot.lane.b32.xlu1 %v3920_v43, %s3691_s26 }
 0x478   : > { %2337 = vrot.lane.b32.xlu1 %v3930_v45, %s3686_s17 }
 0x47c   : > { %2500 = vrot.lane.b32.xlu1 %v3930_v45, %s3687_s8 }
 0x480   : > { %2672 = vrot.lane.b32.xlu1 %v3930_v45, %s3689_s20 }
 0x484   : > { %2843 = vrot.lane.b32.xlu1 %v3930_v45, %s3690_s25 }
 0x488   : > { %726 = vrot.lane.b32.xlu1 %v3858_v12, %s3689_s20 }
 0x48c   : > { %898 = vrot.lane.b32.xlu1 %v3858_v12, %s3690_s25 }
 0x490   : > { %1406 = vrot.lane.b32.xlu1 %v3916_v42, %s3689_s20 }
 0x4d4   : > { %v544_v46 = vpop.xlane.xlu1 %543 }
 0x4d5   : > { %v545_v47 = vsub.f32 %v541_v38, %v544_v46 }
 0x4d7   : > { %v546_v48 = vmul.f32 1.442695, %v545_v47 }
 0x4d8   : > { %v637_v49 = vpop.permute.xlu1 %636 }
 0x4d9   : > { %3493 = vpow2.f32 %v546_v48 }
 0x4dc   : > { %v1145_v50 = vpop.permute.xlu1 %1144 }
 0x4e0   : > { %v1317_v51 = vpop.permute.xlu1 %1316 }
 0x4e4   : > { %v3946_v52 = vpop.permute.xlu1 %1487 }
 0x4e6   : > { %v3494_v53 = vpop.eup %3493 }
 0x4e7   : > { %v548_v54 = vsel %vm377_vm4, %v3494_v53, 0.0 }
 0x4e8   : > { %549 = vadd.xlane.f32.xlu0 %v548_v54  ;;  %v3949_v55 = vpop.permute.xlu1 %1824 }
 0x4ec   : > { %v3951_v56 = vpop.permute.xlu1 %1996 }
 0x4f0   : > { %v3953_v57 = vpop.permute.xlu1 %2167 }
 0x4f4   : > { %v3955_v58 = vpop.permute.xlu1 %2337 }
 0x4f8   : > { %v3957_v59 = vpop.permute.xlu1 %2500 }
 0x4fc   : > { %v3959_v60 = vpop.permute.xlu1 %2672 }
 0x4fe   : > { %810 = vrot.lane.b32.xlu0 %v3850_v10, %s3691_s26 }
 0x500   : > { %v3963_v61 = vpop.permute.xlu1 %2843 }
 0x502   : > { %808 = vrot.lane.b32.xlu0 %v3850_v10, %s3690_s25 }
 0x504   : > { %v727_v62 = vpop.permute.xlu1 %726 }
 0x505   : > { %3283 = vmatpush3.msra.mxu0 %v727_v62 }
 0x506   : > { %981 = vrot.lane.b32.xlu0 %v3910_v41, %s3686_s17  ;;  %3292 = vmatprep.subr.mxu0 %v3683_v0 }
 0x508   : > { %v4166_v16 = vpop.permute.xlu1 %898 }
 0x50a   : > { %1146 = vrot.lane.b32.xlu0 %v3910_v41, %s3685_s15 }
 0x50e   : > { %1318 = vrot.lane.b32.xlu0 %v3910_v41, %s3688_s18 }
 0x512   : > { %1489 = vrot.lane.b32.xlu0 %v3910_v41, %s3691_s26 }
 0x516   : > { %1659 = vrot.lane.b32.xlu0 %v3920_v43, %s3686_s17 }
 0x51a   : > { %1822 = vrot.lane.b32.xlu0 %v3920_v43, %s3687_s8 }
 0x51e   : > { %1994 = vrot.lane.b32.xlu0 %v3920_v43, %s3689_s20 }
 0x522   : > { %2165 = vrot.lane.b32.xlu0 %v3920_v43, %s3690_s25 }
 0x526   : > { %2502 = vrot.lane.b32.xlu0 %v3930_v45, %s3685_s15 }
 0x52a   : > { %2674 = vrot.lane.b32.xlu0 %v3930_v45, %s3688_s18 }
 0x52e   : > { %2845 = vrot.lane.b32.xlu0 %v3930_v45, %s3691_s26 }
 0x532   : > { %1235 = vrot.lane.b32.xlu0 %v3916_v42, %s3687_s8 }
 0x571   : > { %v550_v1 = vpop.xlane.xlu0 %549 }
 0x572   : > { %3495 = vrcp.f32 %v550_v1 }
 0x575   : > { %v811_v2 = vpop.permute.xlu0 %810 }
 0x579   : > { %v809_v3 = vpop.permute.xlu0 %808 }
 0x57d   : > { %v982_v4 = vpop.permute.xlu0 %981 }
 0x57f   : > { %v3496_v5 = vpop.eup %3495 }
 0x580   : > { %v552_v6 = vmul.f32 %v3496_v5, %v3494_v53 }
 0x581   : > { %v1147_v7 = vpop.permute.xlu0 %1146 }
 0x582   : > { %3275 = vmatmul.mubr.msk.f32.vlgmr.msra.gmra.mxu1 %vm377_vm4, %v552_v6 }
 0x583   : > { %3278 = vmatpush3.xpose.msk.msra.mxu1 %vm301_vm2, %v639_v63  ;;  %3279 = vmatprep.mubr.msk.f32.mxu1 %vm3684_vm1, %v3683_v0 }
 0x584   : > { %3287 = vmatprep.subr.mxu1 %v3683_v0 }
 0x585   : > { %v1319_v8 = vpop.permute.xlu0 %1318 }
 0x586   : > { %3280 = vmatmul.mubr.msk.f32.vlgmr.msra.gmra.mxu1 %vm301_vm2, %v637_v49 }
 0x587   : > { %3288 = vmatpush3.xpose.msk.msra.mxu1 %vm301_vm2, %v811_v2  ;;  %3289 = vmatprep.mubr.msk.f32.mxu1 %vm3684_vm1, %v3683_v0 }
 0x588   : > { %3297 = vmatprep.subr.mxu1 %v3683_v0 }
 0x589   : > { %v1490_v9 = vpop.permute.xlu0 %1489 }
 0x58a   : > { %3290 = vmatmul.mubr.msk.f32.vlgmr.msra.gmra.mxu1 %vm301_vm2, %v809_v3 }
 0x58b   : > { %3298 = vmatpush3.xpose.msk.msra.mxu1 %vm301_vm2, %v982_v4  ;;  %3299 = vmatprep.mubr.msk.f32.mxu1 %vm3684_vm1, %v3683_v0 }
 0x58c   : > { %3307 = vmatprep.subr.mxu1 %v3683_v0 }
 0x58d   : > { %v1660_v10 = vpop.permute.xlu0 %1659 }
 0x58e   : > { %3300 = vmatmul.mubr.msk.f32.vlgmr.msra.gmra.mxu1 %vm301_vm2, %v3910_v41 }
 0x58f   : > { %3308 = vmatpush3.xpose.msk.msra.mxu1 %vm301_vm2, %v1147_v7  ;;  %3309 = vmatprep.mubr.msk.f32.mxu1 %vm3684_vm1, %v3683_v0 }
 0x590   : > { %3317 = vmatprep.subr.mxu1 %v3683_v0 }
 0x591   : > { %v1823_v11 = vpop.permute.xlu0 %1822 }
 0x592   : > { %3310 = vmatmul.mubr.msk.f32.vlgmr.msra.gmra.mxu1 %vm301_vm2, %v1145_v50 }
 0x593   : > { %3318 = vmatpush3.xpose.msk.msra.mxu1 %vm301_vm2, %v1319_v8  ;;  %3319 = vmatprep.mubr.msk.f32.mxu1 %vm3684_vm1, %v3683_v0 }
 0x594   : > { %3327 = vmatprep.subr.mxu1 %v3683_v0 }
 0x595   : > { %v1995_v12 = vpop.permute.xlu0 %1994 }
 0x596   : > { %3320 = vmatmul.mubr.msk.f32.vlgmr.msra.gmra.mxu1 %vm301_vm2, %v1317_v51 }
 0x597   : > { %3328 = vmatpush3.xpose.msk.msra.mxu1 %vm301_vm2, %v1490_v9  ;;  %3329 = vmatprep.mubr.msk.f32.mxu1 %vm3684_vm1, %v3683_v0 }
 0x598   : > { %3337 = vmatprep.subr.mxu1 %v3683_v0 }
 0x599   : > { %v2166_v13 = vpop.permute.xlu0 %2165 }
 0x59a   : > { %3330 = vmatmul.mubr.msk.f32.vlgmr.msra.gmra.mxu1 %vm301_vm2, %v3946_v52 }
 0x59b   : > { %3338 = vmatpush3.xpose.msk.msra.mxu1 %vm301_vm2, %v1660_v10  ;;  %3339 = vmatprep.mubr.msk.f32.mxu1 %vm3684_vm1, %v3683_v0 }
 0x59c   : > { %3347 = vmatprep.subr.mxu1 %v3683_v0 }
 0x59d   : > { %v2503_v14 = vpop.permute.xlu0 %2502 }
 0x59e   : > { %3340 = vmatmul.mubr.msk.f32.vlgmr.msra.gmra.mxu1 %vm301_vm2, %v3920_v43 }
 0x59f   : > { %3348 = vmatpush3.xpose.msk.msra.mxu1 %vm301_vm2, %v3949_v55  ;;  %3349 = vmatprep.mubr.msk.f32.mxu1 %vm3684_vm1, %v3683_v0 }
 0x5a0   : > { %3357 = vmatprep.subr.mxu1 %v3683_v0 }
 0x5a1   : > { %v2675_v15 = vpop.permute.xlu0 %2674 }
 0x5a2   : > { %3350 = vmatmul.mubr.msk.f32.vlgmr.msra.gmra.mxu1 %vm301_vm2, %v1823_v11 }
 0x5a3   : > { %3358 = vmatpush3.xpose.msk.msra.mxu1 %vm301_vm2, %v3951_v56  ;;  %3359 = vmatprep.mubr.msk.f32.mxu1 %vm3684_vm1, %v3683_v0 }
 0x5a4   : > { %3367 = vmatprep.subr.mxu1 %v3683_v0 }
 0x5a5   : > { %v2846_v17 = vpop.permute.xlu0 %2845 }
 0x5a6   : > { %3360 = vmatmul.mubr.msk.f32.vlgmr.msra.gmra.mxu1 %vm301_vm2, %v1995_v12 }
 0x5a7   : > { %3368 = vmatpush3.xpose.msk.msra.mxu1 %vm301_vm2, %v3953_v57  ;;  %3369 = vmatprep.mubr.msk.f32.mxu1 %vm3684_vm1, %v3683_v0 }
 0x5a8   : > { %3377 = vmatprep.subr.mxu1 %v3683_v0 }
 0x5aa   : > { %3370 = vmatmul.mubr.msk.f32.vlgmr.msra.gmra.mxu1 %vm301_vm2, %v2166_v13 }
 0x5ab   : > { %3378 = vmatpush3.xpose.msk.msra.mxu1 %vm301_vm2, %v3955_v58  ;;  %3379 = vmatprep.mubr.msk.f32.mxu1 %vm3684_vm1, %v3683_v0 }
 0x5ac   : > { %3387 = vmatprep.subr.mxu1 %v3683_v0 }
 0x5ae   : > { %3380 = vmatmul.mubr.msk.f32.vlgmr.msra.gmra.mxu1 %vm301_vm2, %v3930_v45 }
 0x5af   : > { %3388 = vmatpush3.xpose.msk.msra.mxu1 %vm301_vm2, %v2503_v14  ;;  %3389 = vmatprep.mubr.msk.f32.mxu1 %vm3684_vm1, %v3683_v0 }
 0x5b0   : > { %3397 = vmatprep.subr.mxu1 %v3683_v0 }
 0x5b2   : > { %3390 = vmatmul.mubr.msk.f32.vlgmr.msra.gmra.mxu1 %vm301_vm2, %v3957_v59 }
 0x5b3   : > { %3398 = vmatpush3.xpose.msk.msra.mxu1 %vm301_vm2, %v2675_v15  ;;  %3399 = vmatprep.mubr.msk.f32.mxu1 %vm3684_vm1, %v3683_v0  ;;  %v4162_v15 = vpop.permute.xlu0 %1235 }
 0x5b4   : > { %3407 = vmatprep.subr.mxu1 %v3683_v0 }
 0x5b6   : > { %3400 = vmatmul.mubr.msk.f32.vlgmr.msra.gmra.mxu1 %vm301_vm2, %v3959_v60 }
 0x5b7   : > { %3408 = vmatpush3.xpose.msk.msra.mxu1 %vm301_vm2, %v2846_v17  ;;  %3409 = vmatprep.mubr.msk.f32.mxu1 %vm3684_vm1, %v3683_v0 }
 0x5ba   : > { %3410 = vmatmul.mubr.msk.f32.vlgmr.msra.gmra.mxu1 %vm301_vm2, %v3963_v61 }
 0x642   : > { %v626_v18 = vpop.f32.mrf.mxu1 }
 0x643   : > { %631 = vrot.lane.b32.xlu0 %v626_v18, %s3691_s26  ;;  %v4168_v18 = vpop.permute.xlu1 %1406 }
 0x644   : > { %v3276_v19 = vpop.f32.mrf.mxu1 }
 0x646   : > { %v710_v20 = vpop.f32.mrf.mxu1 }
 0x647   : > { %v4088_v36 = vsel %vm3866_vm3, -inf, %v710_v20 }
 0x648   : > { %v3281_v21 = vpop.f32.mrf.mxu1  ;;  %v715_v41 = vsel %vm377_vm4, %v4088_v36, -inf }
 0x64a   : > { %v882_v22 = vpop.f32.mrf.mxu1 }
 0x64b   : > { %v4076_v23 = vsel %vm3866_vm3, -inf, %v882_v22 }
 0x64c   : > { %v3291_v24 = vpop.f32.mrf.mxu1  ;;  %v887_v25 = vsel %vm377_vm4, %v4076_v23, -inf }
 0x64d   : > { %888 = vmax.xlane.f32.xlu1 %v887_v25 }
 0x64e   : > { %v1053_v26 = vpop.f32.mrf.mxu1 }
 0x64f   : > { %v4100_v43 = vsel %vm3866_vm3, -inf, %v1053_v26 }
 0x650   : > { %v3301_v27 = vpop.f32.mrf.mxu1  ;;  %v1058_v47 = vsel %vm377_vm4, %v4100_v43, -inf }
 0x652   : > { %v1218_v28 = vpop.f32.mrf.mxu1 }
 0x653   : > { %v4106_v48 = vsel %vm3866_vm3, -inf, %v1218_v28 }
 0x654   : > { %v3311_v29 = vpop.f32.mrf.mxu1  ;;  %v1223_v53 = vsel %vm377_vm4, %v4106_v48, -inf }
 0x656   : > { %v1390_v30 = vpop.f32.mrf.mxu1 }
 0x657   : > { %v4082_v31 = vsel %vm3866_vm3, -inf, %v1390_v30 }
 0x658   : > { %v3321_v32 = vpop.f32.mrf.mxu1  ;;  %v1395_v33 = vsel %vm377_vm4, %v4082_v31, -inf }
 0x659   : > { %1396 = vmax.xlane.f32.xlu1 %v1395_v33 }
 0x65a   : > { %v1561_v34 = vpop.f32.mrf.mxu1 }
 0x65b   : > { %v4118_v54 = vsel %vm3866_vm3, -inf, %v1561_v34 }
 0x65c   : > { %v3331_v35 = vpop.f32.mrf.mxu1  ;;  %v1566_v57 = vsel %vm377_vm4, %v4118_v54, -inf }
 0x65e   : > { %v1731_v37 = vpop.f32.mrf.mxu1 }
 0x65f   : > { %v4092_v38 = vsel %vm3866_vm3, -inf, %v1731_v37 }
 0x660   : > { %v3341_v39 = vpop.f32.mrf.mxu1  ;;  %v1736_v40 = vsel %vm377_vm4, %v4092_v38, -inf }
 0x661   : > { %1737 = vmax.xlane.f32.xlu1 %v1736_v40 }
 0x662   : > { %v1896_v45 = vpop.f32.mrf.mxu1  ;;  %716 = vmax.xlane.f32.xlu0 %v715_v41 }
 0x663   : > { %v4124_v58 = vsel %vm3866_vm3, -inf, %v1896_v45 }
 0x664   : > { %v3351_v46 = vpop.f32.mrf.mxu1  ;;  %v1901_v63 = vsel %vm377_vm4, %v4124_v58, -inf }
 0x666   : > { %v2068_v49 = vpop.f32.mrf.mxu1  ;;  %1059 = vmax.xlane.f32.xlu0 %v1058_v47 }
 0x667   : > { %v4110_v50 = vsel %vm3866_vm3, -inf, %v2068_v49 }
 0x668   : > { %v3361_v51 = vpop.f32.mrf.mxu1  ;;  %v2073_v52 = vsel %vm377_vm4, %v4110_v50, -inf }
 0x669   : > { %2074 = vmax.xlane.f32.xlu1 %v2073_v52 }
 0x66a   : > { %v2239_v55 = vpop.f32.mrf.mxu1  ;;  %1224 = vmax.xlane.f32.xlu0 %v1223_v53 }
 0x66b   : > { %v4136_v1 = vsel %vm3866_vm3, -inf, %v2239_v55 }
 0x66c   : > { %v3371_v56 = vpop.f32.mrf.mxu1  ;;  %v2244_v5 = vsel %vm377_vm4, %v4136_v1, -inf }
 0x66e   : > { %1567 = vmax.xlane.f32.xlu0 %v1566_v57  ;;  %v2409_v59 = vpop.f32.mrf.mxu1 }
 0x66f   : > { %v4128_v60 = vsel %vm3866_vm3, -inf, %v2409_v59 }
 0x670   : > { %v3381_v61 = vpop.f32.mrf.mxu1  ;;  %v2414_v62 = vsel %vm377_vm4, %v4128_v60, -inf }
 0x671   : > { %2415 = vmax.xlane.f32.xlu1 %v2414_v62 }
 0x672   : > { %1902 = vmax.xlane.f32.xlu0 %v1901_v63  ;;  %v2574_v2 = vpop.f32.mrf.mxu1 }
 0x673   : > { %v4140_v3 = vsel %vm3866_vm3, -inf, %v2574_v2 }
 0x674   : > { %v3391_v4 = vpop.f32.mrf.mxu1  ;;  %v2579_v8 = vsel %vm377_vm4, %v4140_v3, -inf }
 0x676   : > { %2245 = vmax.xlane.f32.xlu0 %v2244_v5  ;;  %v2746_v6 = vpop.f32.mrf.mxu1 }
 0x677   : > { %v4146_v7 = vsel %vm3866_vm3, -inf, %v2746_v6  ;;  %v4219_v6 = vpop.f32.mrf.mxu0 }
 0x678   : > { %v2751_v9 = vsel %vm377_vm4, %v4146_v7, -inf  ;;  %v3401_v10 = vpop.f32.mrf.mxu1 }
 0x679   : > { %2752 = vmax.xlane.f32.xlu1 %v2751_v9 }
 0x67a   : > { %2580 = vmax.xlane.f32.xlu0 %v2579_v8  ;;  %v2917_v11 = vpop.f32.mrf.mxu1 }
 0x67b   : > { %v4154_v12 = vsel %vm3866_vm3, -inf, %v2917_v11 }
 0x67c   : > { %v2922_v13 = vsel %vm377_vm4, %v4154_v12, -inf  ;;  %v3411_v14 = vpop.f32.mrf.mxu1 }
 0x67e   : > { %2923 = vmax.xlane.f32.xlu0 %v2922_v13 }
 0x68a   : > { %1577 = vrot.lane.b32.xlu1 %v3916_v42, %s3690_s25 }
 0x694   : > { %1913 = vrot.lane.b32.xlu0 %v3926_v44, %s3687_s8 }
 0x6b5   : > { %v632_v17 = vpop.permute.xlu0 %631 }
 0x6b6   : > { %635 = vst.msk [vmem:[%s3901_s19] sm:$0xff] %vm634_vm5, %v632_v17 }
 0x6d6   : > { %v889_v19 = vpop.xlane.xlu1 %888 }
 0x6d7   : > { %v890_v20 = vsub.f32 %v4076_v23, %v889_v19 }
 0x6d9   : > { %v891_v21 = vmul.f32 1.442695, %v890_v20 }
 0x6db   : > { %3497 = vpow2.f32 %v891_v21 }
 0x6e2   : > { %v1397_v25 = vpop.xlane.xlu1 %1396 }
 0x6e3   : > { %v1398_v28 = vsub.f32 %v4082_v31, %v1397_v25 }
 0x6e5   : > { %v1399_v23 = vmul.f32 1.442695, %v1398_v28 }
 0x6e8   : > { %v4171_v22 = vpop.eup %3497 }
 0x6e9   : > { %v893_v24 = vsel %vm377_vm4, %v4171_v22, 0.0 }
 0x6ea   : > { %894 = vadd.xlane.f32.xlu0 %v893_v24  ;;  %v1738_v34 = vpop.xlane.xlu1 %1737 }
 0x6eb   : > { %v717_v26 = vpop.xlane.xlu0 %716  ;;  %v1739_v39 = vsub.f32 %v4092_v38, %v1738_v34 }
 0x6ec   : > { %v718_v27 = vsub.f32 %v4088_v36, %v717_v26 }
 0x6ed   : > { %v1740_v45 = vmul.f32 1.442695, %v1739_v39 }
 0x6ee   : > { %v719_v29 = vmul.f32 1.442695, %v718_v27 }
 0x6ef   : > { %v1060_v30 = vpop.xlane.xlu0 %1059 }
 0x6f0   : > { %3499 = vpow2.f32 %v719_v29  ;;  %v1061_v32 = vsub.f32 %v4100_v43, %v1060_v30 }
 0x6f2   : > { %v1062_v33 = vmul.f32 1.442695, %v1061_v32  ;;  %v2075_v41 = vpop.xlane.xlu1 %2074 }
 0x6f3   : > { %v1225_v35 = vpop.xlane.xlu0 %1224  ;;  %v2076_v46 = vsub.f32 %v4110_v50, %v2075_v41 }
 0x6f4   : > { %3501 = vpow2.f32 %v1062_v33  ;;  %v1226_v37 = vsub.f32 %v4106_v48, %v1225_v35 }
 0x6f5   : > { %3503 = vpow2.f32 %v1399_v23  ;;  %v2077_v48 = vmul.f32 1.442695, %v2076_v46 }
 0x6f6   : > { %v1227_v40 = vmul.f32 1.442695, %v1226_v37 }
 0x6f7   : > { %v1568_v36 = vpop.xlane.xlu0 %1567 }
 0x6f8   : > { %3505 = vpow2.f32 %v1227_v40  ;;  %v1569_v31 = vsub.f32 %v4118_v54, %v1568_v36 }
 0x6fa   : > { %v1570_v43 = vmul.f32 1.442695, %v1569_v31  ;;  %v2416_v9 = vpop.xlane.xlu1 %2415 }
 0x6fb   : > { %v1903_v47 = vpop.xlane.xlu0 %1902  ;;  %v2417_v10 = vsub.f32 %v4128_v60, %v2416_v9 }
 0x6fc   : > { %3507 = vpow2.f32 %v1570_v43  ;;  %v1904_v49 = vsub.f32 %v4124_v58, %v1903_v47 }
 0x6fd   : > { %v4183_v51 = vpop.eup %3499  ;;  %3509 = vpow2.f32 %v1740_v45  ;;  %v2418_v17 = vmul.f32 1.442695, %v2417_v10 }
 0x6fe   : > { %v1905_v52 = vmul.f32 1.442695, %v1904_v49  ;;  %v721_v38 = vsel %vm377_vm4, %v4183_v51, 0.0 }
 0x6ff   : > { %722 = vadd.xlane.f32.xlu1 %v721_v38  ;;  %v2246_v8 = vpop.xlane.xlu0 %2245 }
 0x700   : > { %3511 = vpow2.f32 %v1905_v52  ;;  %v2247_v13 = vsub.f32 %v4136_v1, %v2246_v8 }
 0x701   : > { %v4187_v53 = vpop.eup %3501  ;;  %3513 = vpow2.f32 %v2077_v48 }
 0x702   : > { %v1064_v50 = vsel %vm377_vm4, %v4187_v53, 0.0  ;;  %v4191_v54 = vpop.eup %3503  ;;  %v2753_v14 = vpop.xlane.xlu1 %2752  ;;  %v2248_v20 = vmul.f32 1.442695, %v2247_v13  ;;  %3515 = vpow2.f32 %v2418_v17 }
 0x703   : > { %1065 = vadd.xlane.f32.xlu1 %v1064_v50  ;;  %v1401_v57 = vsel %vm377_vm4, %v4191_v54, 0.0  ;;  %v2581_v11 = vpop.xlane.xlu0 %2580  ;;  %v2754_v19 = vsub.f32 %v4146_v7, %v2753_v14 }
 0x704   : > { %v2582_v21 = vsub.f32 %v4140_v3, %v2581_v11  ;;  %3517 = vpow2.f32 %v2248_v20 }
 0x705   : > { %v4193_v55 = vpop.eup %3505  ;;  %v2755_v25 = vmul.f32 1.442695, %v2754_v19 }
 0x706   : > { %v1229_v56 = vsel %vm377_vm4, %v4193_v55, 0.0  ;;  %v2583_v26 = vmul.f32 1.442695, %v2582_v21  ;;  %v1578_v34 = vpop.permute.xlu1 %1577 }
 0x707   : > { %1230 = vadd.xlane.f32.xlu0 %v1229_v56  ;;  %1402 = vadd.xlane.f32.xlu1 %v1401_v57  ;;  %v2924_v24 = vpop.xlane.xlu0 %2923  ;;  %3519 = vpow2.f32 %v2755_v25 }
 0x708   : > { %v2925_v27 = vsub.f32 %v4154_v12, %v2924_v24  ;;  %3521 = vpow2.f32 %v2583_v26 }
 0x709   : > { %v4199_v58 = vpop.eup %3507 }
 0x70a   : > { %v1572_v59 = vsel %vm377_vm4, %v4199_v58, 0.0  ;;  %v4203_v61 = vpop.eup %3509  ;;  %v2926_v60 = vmul.f32 1.442695, %v2925_v27 }
 0x70b   : > { %1573 = vadd.xlane.f32.xlu1 %v1572_v59  ;;  %v1742_v2 = vsel %vm377_vm4, %v4203_v61, 0.0  ;;  %v1914_v35 = vpop.permute.xlu0 %1913 }
 0x70c   : > { %3523 = vpow2.f32 %v2926_v60 }
 0x70d   : > { %v4205_v62 = vpop.eup %3511 }
 0x70e   : > { %v1907_v63 = vsel %vm377_vm4, %v4205_v62, 0.0  ;;  %v4211_v4 = vpop.eup %3513 }
 0x70f   : > { %1908 = vadd.xlane.f32.xlu0 %v1907_v63  ;;  %1743 = vadd.xlane.f32.xlu1 %v1742_v2  ;;  %v2079_v5 = vsel %vm377_vm4, %v4211_v4, 0.0  ;;  %v4228_v28 = vpop.eup %3515 }
 0x710   : > { %v2420_v3 = vsel %vm377_vm4, %v4228_v28, 0.0 }
 0x711   : > { %v4230_v1 = vpop.eup %3517 }
 0x712   : > { %v2250_v7 = vsel %vm377_vm4, %v4230_v1, 0.0 }
 0x713   : > { %2080 = vadd.xlane.f32.xlu1 %v2079_v5 }
 0x714   : > { %v4232_v29 = vpop.eup %3519 }
 0x715   : > { %v4238_v30 = vpop.eup %3521  ;;  %v2757_v12 = vsel %vm377_vm4, %v4232_v29, 0.0 }
 0x716   : > { %v2585_v32 = vsel %vm377_vm4, %v4238_v30, 0.0 }
 0x719   : > { %v4244_v23 = vpop.eup %3523 }
 0x71a   : > { %v2928_v33 = vsel %vm377_vm4, %v4244_v23, 0.0 }
 0x724   : > { %2084 = vrot.lane.b32.xlu1 %v3926_v44, %s3689_s20 }
 0x725   : > { %2255 = vrot.lane.b32.xlu0 %v3926_v44, %s3690_s25 }
 0x729   : > { %2591 = vrot.lane.b32.xlu0 %v4219_v6, %s3687_s8 }
 0x748   : > { %2421 = vadd.xlane.f32.xlu1 %v2420_v3  ;;  %2251 = vadd.xlane.f32.xlu0 %v2250_v7 }
 0x74c   : > { %2758 = vadd.xlane.f32.xlu1 %v2757_v12  ;;  %2586 = vadd.xlane.f32.xlu0 %v2585_v32 }
 0x750   : > { %2929 = vadd.xlane.f32.xlu0 %v2928_v33 }
 0x75d   : > { %2933 = vrot.lane.b32.xlu1 %v4219_v6, %s3690_s25 }
 0x766   : > { %2762 = vrot.lane.b32.xlu0 %v4219_v6, %s3689_s20 }
 0x773   : > { %v895_v37 = vpop.xlane.xlu0 %894 }
 0x788   : > { %v723_v39 = vpop.xlane.xlu1 %722 }
 0x789   : > { %3525 = vrcp.f32 %v723_v39 }
 0x78a   : > { %3527 = vrcp.f32 %v895_v37 }
 0x78c   : > { %v1066_v40 = vpop.xlane.xlu1 %1065 }
 0x78d   : > { %3529 = vrcp.f32 %v1066_v40 }
 0x790   : > { %v1231_v41 = vpop.xlane.xlu0 %1230  ;;  %v1403_v36 = vpop.xlane.xlu1 %1402 }
 0x791   : > { %3531 = vrcp.f32 %v1231_v41 }
 0x792   : > { %3533 = vrcp.f32 %v1403_v36 }
 0x794   : > { %v1574_v45 = vpop.xlane.xlu1 %1573 }
 0x795   : > { %3535 = vrcp.f32 %v1574_v45 }
 0x796   : > { %v3526_v31 = vpop.eup %3525 }
 0x797   : > { %v725_v46 = vmul.f32 %v3526_v31, %v4183_v51  ;;  %v3528_v43 = vpop.eup %3527 }
 0x798   : > { %v897_v47 = vmul.f32 %v3528_v43, %v4171_v22  ;;  %v1744_v48 = vpop.xlane.xlu1 %1743  ;;  %v1909_v52 = vpop.xlane.xlu0 %1908 }
 0x799   : > { %3285 = vmatmul.mubr.msk.f32.vlgmr.msra.gmra.mxu0 %vm377_vm4, %v725_v46  ;;  %3537 = vrcp.f32 %v1744_v48 }
 0x79a   : > { %3293 = vmatpush3.msra.mxu0 %v4166_v16  ;;  %3294 = vmatprep.mubr.msk.f32.mxu0 %vm3684_vm1, %v3683_v0  ;;  %v3530_v49 = vpop.eup %3529  ;;  %3539 = vrcp.f32 %v1909_v52 }
 0x79b   : > { %3302 = vmatprep.subr.mxu0 %v3683_v0  ;;  %v1068_v16 = vmul.f32 %v3530_v49, %v4187_v53 }
 0x79c   : > { %v2081_v38 = vpop.xlane.xlu1 %2080  ;;  %v2256_v59 = vpop.permute.xlu0 %2255 }
 0x79d   : > { %3295 = vmatmul.mubr.msk.f32.vlgmr.msra.gmra.mxu0 %vm377_vm4, %v897_v47  ;;  %3541 = vrcp.f32 %v2081_v38 }
 0x79e   : > { %3303 = vmatpush3.msra.mxu0 %v3916_v42  ;;  %3304 = vmatprep.mubr.msk.f32.mxu0 %vm3684_vm1, %v3683_v0  ;;  %v3532_v51 = vpop.eup %3531 }
 0x79f   : > { %3312 = vmatprep.subr.mxu0 %v3683_v0  ;;  %v1233_v42 = vmul.f32 %v3532_v51, %v4193_v55  ;;  %v3534_v22 = vpop.eup %3533 }
 0x7a1   : > { %3305 = vmatmul.mubr.msk.f32.vlgmr.msra.gmra.mxu0 %vm377_vm4, %v1068_v16 }
 0x7a2   : > { %3313 = vmatpush3.msra.mxu0 %v4162_v15  ;;  %3314 = vmatprep.mubr.msk.f32.mxu0 %vm3684_vm1, %v3683_v0  ;;  %v1405_v15 = vmul.f32 %v3534_v22, %v4191_v54  ;;  %v3536_v53 = vpop.eup %3535 }
 0x7a3   : > { %3322 = vmatprep.subr.mxu0 %v3683_v0  ;;  %v1576_v50 = vmul.f32 %v3536_v53, %v4199_v58 }
 0x7a5   : > { %3315 = vmatmul.mubr.msk.f32.vlgmr.msra.gmra.mxu0 %vm377_vm4, %v1233_v42 }
 0x7a6   : > { %3323 = vmatpush3.msra.mxu0 %v4168_v18  ;;  %3324 = vmatprep.mubr.msk.f32.mxu0 %vm3684_vm1, %v3683_v0  ;;  %v3538_v18 = vpop.eup %3537 }
 0x7a7   : > { %3332 = vmatprep.subr.mxu0 %v3683_v0  ;;  %v1746_v54 = vmul.f32 %v3538_v18, %v4203_v61  ;;  %v3540_v55 = vpop.eup %3539  ;;  %v2592_v61 = vpop.permute.xlu0 %2591 }
 0x7a8   : > { %v1911_v56 = vmul.f32 %v3540_v55, %v4205_v62 }
 0x7a9   : > { %3325 = vmatmul.mubr.msk.f32.vlgmr.msra.gmra.mxu0 %vm377_vm4, %v1405_v15 }
 0x7aa   : > { %3333 = vmatpush3.msra.mxu0 %v1578_v34  ;;  %3334 = vmatprep.mubr.msk.f32.mxu0 %vm3684_vm1, %v3683_v0  ;;  %v3542_v57 = vpop.eup %3541 }
 0x7ab   : > { %3342 = vmatprep.subr.mxu0 %v3683_v0  ;;  %v2083_v58 = vmul.f32 %v3542_v57, %v4211_v4 }
 0x7ad   : > { %3335 = vmatmul.mubr.msk.f32.vlgmr.msra.gmra.mxu0 %vm377_vm4, %v1576_v50 }
 0x7ae   : > { %3343 = vmatpush3.msra.mxu0 %v3926_v44  ;;  %3344 = vmatprep.mubr.msk.f32.mxu0 %vm3684_vm1, %v3683_v0  ;;  %v2085_v44 = vpop.permute.xlu1 %2084 }
 0x7af   : > { %3352 = vmatprep.subr.mxu0 %v3683_v0 }
 0x7b1   : > { %3345 = vmatmul.mubr.msk.f32.vlgmr.msra.gmra.mxu0 %vm377_vm4, %v1746_v54 }
 0x7b2   : > { %3353 = vmatpush3.msra.mxu0 %v1914_v35  ;;  %3354 = vmatprep.mubr.msk.f32.mxu0 %vm3684_vm1, %v3683_v0 }
 0x7b3   : > { %3362 = vmatprep.subr.mxu0 %v3683_v0 }
 0x7b5   : > { %3355 = vmatmul.mubr.msk.f32.vlgmr.msra.gmra.mxu0 %vm377_vm4, %v1911_v56 }
 0x7b6   : > { %3363 = vmatpush3.msra.mxu0 %v2085_v44  ;;  %3364 = vmatprep.mubr.msk.f32.mxu0 %vm3684_vm1, %v3683_v0 }
 0x7b7   : > { %3372 = vmatprep.subr.mxu0 %v3683_v0 }
 0x7b9   : > { %3365 = vmatmul.mubr.msk.f32.vlgmr.msra.gmra.mxu0 %vm377_vm4, %v2083_v58 }
 0x7ba   : > { %3373 = vmatpush3.msra.mxu0 %v2256_v59  ;;  %3374 = vmatprep.mubr.msk.f32.mxu0 %vm3684_vm1, %v3683_v0 }
 0x7bb   : > { %3382 = vmatprep.subr.mxu0 %v3683_v0 }
 0x7d1   : > { %v2252_v62 = vpop.xlane.xlu0 %2251  ;;  %v2422_v63 = vpop.xlane.xlu1 %2421 }
 0x7d2   : > { %3543 = vrcp.f32 %v2252_v62 }
 0x7d3   : > { %3545 = vrcp.f32 %v2422_v63 }
 0x7d5   : > { %v2587_v2 = vpop.xlane.xlu0 %2586  ;;  %v2759_v5 = vpop.xlane.xlu1 %2758 }
 0x7d6   : > { %3547 = vrcp.f32 %v2587_v2 }
 0x7d7   : > { %3549 = vrcp.f32 %v2759_v5 }
 0x7d9   : > { %v2930_v8 = vpop.xlane.xlu0 %2929  ;;  %v2934_v21 = vpop.permute.xlu1 %2933 }
 0x7da   : > { %3551 = vrcp.f32 %v2930_v8 }
 0x7df   : > { %v3544_v4 = vpop.eup %3543 }
 0x7e0   : > { %v2254_v9 = vmul.f32 %v3544_v4, %v4230_v1  ;;  %v3546_v10 = vpop.eup %3545 }
 0x7e1   : > { %v2424_v11 = vmul.f32 %v3546_v10, %v4228_v28 }
 0x7e2   : > { %3375 = vmatmul.mubr.msk.f32.vlgmr.msra.gmra.mxu0 %vm377_vm4, %v2254_v9 }
 0x7e3   : > { %3383 = vmatpush3.msra.mxu0 %v4219_v6  ;;  %3384 = vmatprep.mubr.msk.f32.mxu0 %vm3684_vm1, %v3683_v0  ;;  %v3548_v13 = vpop.eup %3547  ;;  %v2763_v6 = vpop.permute.xlu0 %2762 }
 0x7e4   : > { %3392 = vmatprep.subr.mxu0 %v3683_v0  ;;  %v2589_v14 = vmul.f32 %v3548_v13, %v4238_v30  ;;  %v3550_v17 = vpop.eup %3549 }
 0x7e5   : > { %v2761_v19 = vmul.f32 %v3550_v17, %v4232_v29 }
 0x7e6   : > { %3385 = vmatmul.mubr.msk.f32.vlgmr.msra.gmra.mxu0 %vm377_vm4, %v2424_v11 }
 0x7e7   : > { %3393 = vmatpush3.msra.mxu0 %v2592_v61  ;;  %3394 = vmatprep.mubr.msk.f32.mxu0 %vm3684_vm1, %v3683_v0  ;;  %v3552_v20 = vpop.eup %3551 }
 0x7e8   : > { %3402 = vmatprep.subr.mxu0 %v3683_v0  ;;  %v2932_v24 = vmul.f32 %v3552_v20, %v4244_v23 }
 0x7ea   : > { %3395 = vmatmul.mubr.msk.f32.vlgmr.msra.gmra.mxu0 %vm377_vm4, %v2589_v14 }
 0x7eb   : > { %3403 = vmatpush3.msra.mxu0 %v2763_v6  ;;  %3404 = vmatprep.mubr.msk.f32.mxu0 %vm3684_vm1, %v3683_v0 }
 0x7ec   : > { %3412 = vmatprep.subr.mxu0 %v3683_v0 }
 0x7ee   : > { %3405 = vmatmul.mubr.msk.f32.vlgmr.msra.gmra.mxu0 %vm377_vm4, %v2761_v19 }
 0x7ef   : > { %3413 = vmatpush3.msra.mxu0 %v2934_v21  ;;  %3414 = vmatprep.mubr.msk.f32.mxu0 %vm3684_vm1, %v3683_v0 }
 0x7f2   : > { %3415 = vmatmul.mubr.msk.f32.vlgmr.msra.gmra.mxu0 %vm377_vm4, %v2932_v24 }
 0x859   : > { %v798_v25 = vpop.f32.mrf.mxu0 }
 0x85a   : > { %803 = vrot.lane.b32.xlu0 %v798_v25, %s3688_s18 }
 0x85b   : > { %v3286_v26 = vpop.f32.mrf.mxu0 }
 0x85d   : > { %v970_v27 = vpop.f32.mrf.mxu0 }
 0x85e   : > { %975 = vrot.lane.b32.xlu1 %v970_v27, %s3685_s15 }
 0x85f   : > { %v3296_v60 = vpop.f32.mrf.mxu0 }
 0x861   : > { %v1138_v28 = vpop.f32.mrf.mxu0 }
 0x862   : > { %3141 = vst.msk [vmem:[%s3901_s19 + $0x8] sm:$0xff] %vm301_vm2, %v1138_v28 }
 0x863   : > { %v3306_v1 = vpop.f32.mrf.mxu0 }
 0x865   : > { %v1307_v29 = vpop.f32.mrf.mxu0 }
 0x866   : > { %1312 = vrot.lane.b32.xlu0 %v1307_v29, %s3691_s26 }
 0x867   : > { %v3316_v0 = vpop.f32.mrf.mxu0 }
 0x869   : > { %v1478_v3 = vpop.f32.mrf.mxu0 }
 0x86a   : > { %1483 = vrot.lane.b32.xlu1 %v1478_v3, %s3688_s18 }
 0x86b   : > { %v3326_v7 = vpop.f32.mrf.mxu0 }
 0x86d   : > { %v1649_v30 = vpop.f32.mrf.mxu0 }
 0x86e   : > { %1654 = vrot.lane.b32.xlu0 %v1649_v30, %s3685_s15 }
 0x86f   : > { %v3336_v12 = vpop.f32.mrf.mxu0 }
 0x871   : > { %v1816_v32 = vpop.f32.mrf.mxu0 }
 0x872   : > { %3157 = vst.msk [vmem:[%s3901_s19 + $0x10] sm:$0xff] %vm301_vm2, %v1816_v32 }
 0x873   : > { %v3346_v23 = vpop.f32.mrf.mxu0 }
 0x875   : > { %v1985_v33 = vpop.f32.mrf.mxu0 }
 0x876   : > { %1990 = vrot.lane.b32.xlu1 %v1985_v33, %s3691_s26 }
 0x877   : > { %v3356_v34 = vpop.f32.mrf.mxu0 }
 0x879   : > { %v2156_v35 = vpop.f32.mrf.mxu0 }
 0x87a   : > { %2161 = vrot.lane.b32.xlu0 %v2156_v35, %s3688_s18 }
 0x87b   : > { %v3366_v37 = vpop.f32.mrf.mxu0 }
 0x8a2   : > { %v2327_v39 = vpop.f32.mrf.mxu0 }
 0x8a3   : > { %2332 = vrot.lane.b32.xlu1 %v2327_v39, %s3685_s15 }
 0x8a4   : > { %v3376_v40 = vpop.f32.mrf.mxu0 }
 0x8a6   : > { %v2494_v41 = vpop.f32.mrf.mxu0 }
 0x8a7   : > { %3173 = vst.msk [vmem:[%s3901_s19 + $0x18] sm:$0xff] %vm301_vm2, %v2494_v41 }
 0x8a8   : > { %v3386_v36 = vpop.f32.mrf.mxu0 }
 0x8aa   : > { %v2663_v31 = vpop.f32.mrf.mxu0 }
 0x8ab   : > { %2668 = vrot.lane.b32.xlu0 %v2663_v31, %s3691_s26 }
 0x8ac   : > { %v3396_v45 = vpop.f32.mrf.mxu0 }
 0x8ae   : > { %v2834_v46 = vpop.f32.mrf.mxu0 }
 0x8af   : > { %2839 = vrot.lane.b32.xlu1 %v2834_v46, %s3688_s18 }
 0x8b0   : > { %v3406_v43 = vpop.f32.mrf.mxu0 }
 0x8b2   : > { %v3005_v47 = vpop.f32.mrf.mxu0 }
 0x8b3   : > { %3010 = vrot.lane.b32.xlu0 %v3005_v47, %s3685_s15 }
 0x8b4   : > { %v3416_v49 = vpop.f32.mrf.mxu0 }
 0x8cc   : > { %v804_v48 = vpop.permute.xlu0 %803 }
 0x8cd   : > { %807 = vst.msk [vmem:[%s3901_s19] sm:$0xff] %vm806_vm6, %v804_v48 }
 0x8d0   : > { %v976_v16 = vpop.permute.xlu1 %975 }
 0x8d1   : > { %979 = vst.msk [vmem:[%s3901_s19] sm:$0xff] %vm978_vm7, %v976_v16 }
 0x8d8   : > { %v1313_v51 = vpop.permute.xlu0 %1312 }
 0x8d9   : > { %3145 = vst.msk [vmem:[%s3901_s19 + $0x8] sm:$0xff] %vm634_vm5, %v1313_v51 }
 0x8dc   : > { %v1484_v52 = vpop.permute.xlu1 %1483 }
 0x8dd   : > { %3149 = vst.msk [vmem:[%s3901_s19 + $0x8] sm:$0xff] %vm806_vm6, %v1484_v52 }
 0x8e0   : > { %v1655_v42 = vpop.permute.xlu0 %1654 }
 0x8e1   : > { %3153 = vst.msk [vmem:[%s3901_s19 + $0x8] sm:$0xff] %vm978_vm7, %v1655_v42 }
 0x8e8   : > { %v1991_v22 = vpop.permute.xlu1 %1990 }
 0x8e9   : > { %3161 = vst.msk [vmem:[%s3901_s19 + $0x10] sm:$0xff] %vm634_vm5, %v1991_v22 }
 0x8ec   : > { %v2162_v38 = vpop.permute.xlu0 %2161 }
 0x8ed   : > { %3165 = vst.msk [vmem:[%s3901_s19 + $0x10] sm:$0xff] %vm806_vm6, %v2162_v38 }
 0x915   : > { %v2333_v15 = vpop.permute.xlu1 %2332 }
 0x916   : > { %3169 = vst.msk [vmem:[%s3901_s19 + $0x10] sm:$0xff] %vm978_vm7, %v2333_v15 }
 0x91d   : > { %v2669_v53 = vpop.permute.xlu0 %2668 }
 0x91e   : > { %3177 = vst.msk [vmem:[%s3901_s19 + $0x18] sm:$0xff] %vm634_vm5, %v2669_v53 }
 0x921   : > { %v2840_v50 = vpop.permute.xlu1 %2839 }
 0x922   : > { %3181 = vst.msk [vmem:[%s3901_s19 + $0x18] sm:$0xff] %vm806_vm6, %v2840_v50 }
 0x925   : > { %v3011_v18 = vpop.permute.xlu0 %3010 }
 0x926   : > { %3185 = vst.msk [vmem:[%s3901_s19 + $0x18] sm:$0xff] %vm978_vm7, %v3011_v18 }
 0x927   : > { %3620 = shalt.err (!%p3617_p0)
}
 0x928   : > { %s3621_s24 = scalar_lea.hbm %s4366_s5, 512  ;;  %s3625_s8 = scalar_lea.hbm %s4415_s2, 1024 }
 0x929   : > { %p3622_p5 = scmp.ne.s32.totalorder %s4366_s5, %s3621_s24  ;;  %p3626_p4 = scmp.lt.s32.totalorder %s4366_s5, %s4415_s2 }
 0x92a   : > { %p3627_p6 = scmp.lt.s32.totalorder %s3625_s8, %s3621_s24 }
 0x92b   : > { %p3623_p9 = pnand %p3622_p5, %p4433_p11 }
 0x92c   : > { %p3628_p8 = por %p3627_p6, %p3626_p4 }
 0x92d   : > { %p3624_p1 = pneg %p3623_p9 }
 0x92f   : > { %p3629_p3 = pnand %p3628_p8, %p3624_p1 }
 0x931   : > { %3632 = shalt.err (!%p3629_p3)
}
 0x932   : > { %s3693_s20 = smov 128   ;;  %s3694_s25 = smov 8  }
 0x933   : > { %3423 = dma.vmem_to_hbm [thread:$0]  (%p4433_p11), %s4368_s28, 512, %s4366_s5, %s3015_s6, %s3693_s20, %s3693_s20, %s3694_s25  }
 0x934 PF: > { %s3043_s26 = sand.u32 1, %s3663_s9   ;;  %p4434_p7 = scmp.ne.s32.totalorder %s4421_s16, 0 }
 0x935   : > { %p4435_p12 = scmp.ge.s32.totalorder %s3675_s12, 2  ;;  %s3044_s27 = scalar_lea.sflag [#allocation4], %s3043_s26 }
 0x937   : > { %p3434_p10 = pnand %p4435_p12, %p4434_p7 }
 0x939   : > { %p3435_p2 = pneg %p3434_p10 }
 0x93b   : > { %3658 = dma.done.wait (%p3435_p2), %s3044_s27, 512  }
 0x93c   : > { %3660 = vsyncadd (%p3435_p2), %s3044_s27, 4294966784  ;;  %p16_p13 = scmp.ge.s32.totalorder %s3764_s21, 4   ;;  %s4436_s9 = smov %s3667_s10 }
 0x93d   : > { %s4437_s10 = smov %s3671_s11  ;;  %s4438_s11 = smov %s3781_s29 }
 0x93e   : > { %s4439_s12 = smov %s3764_s21  ;;  %18 = sbr.rel (!%p16_p13) target bundleno = 6 (0x6), region = 80 }
 0x943   :  { %3049 = vsyncpa [#allocation3], 1 }
 0x944   :  { %3051 = vsyncpa [#allocation3 + $0x1], 1 }
 0x945   :  { %3052 = vsyncpa [#allocation6], 1 }
 0x946   :  { %3053 = vsyncpa [#allocation4], 1 }
 0x947   :  { %3055 = vsyncpa [#allocation4 + $0x1], 1 }

</bundles_post_ra>
